<compile_context>
chip_gen: v7x
topology: tpu7x:2x2x1
jax: 0.10.0
libtpu: 0.0.40
codegen_flags: <defaults>
</compile_context>

<pallas_src>
import functools
import math

import jax
import jax.numpy as jnp
from jax.experimental import pallas as pl
from jax.experimental.pallas import tpu as pltpu

WIN = 3  # win_w == win_h == 3 (odd patch size -> valid branch of calcIJ_new)


def _pick_row_tile(n):
    # Largest sublane-aligned row tile that divides N; keeps the counts
    # accumulator + row block within a comfortable vreg budget.
    for tr in (64, 32, 16, 8):
        if n % tr == 0:
            return tr
    return n  # odd N: single row block (still correct, just more registers)


def _pick_unroll(n):
    for u in (8, 4, 2):
        if n % u == 0:
            return u
    return 1


def _channel_block(bc):
    # Lane-dim block: multiple of 128 (dense lanes + >=2 parallel grid steps
    # for megacore) when B*C allows it, otherwise the full channel extent so
    # the BlockSpec last dim equals the array dim (satisfies lane constraint).
    if bc % 128 == 0 and bc >= 256:
        return 128
    return bc


def _fused_kernel(xp_ref, h_ref, ij_ref, *, n_pad, unroll, row_tile):
    """Fused ij-stencil + histogram-entropy for one block of channels.

    xp_ref: (H+2, W+2, CB) zero-padded images, channels-last (lanes = channels)
    h_ref : (1, 1, CB) per-channel entropy (lane-dense output)
    ij_ref: (N, CB) VMEM scratch holding the flattened ij values
    """
    Hp, Wp, CB = xp_ref.shape
    H, W = Hp - 2, Wp - 2
    N = H * W

    # --- Stage 1: separable 3x3 sum over the zero-padded image -------------
    xp = xp_ref[...]
    rs = xp[0:H] + xp[1:H + 1] + xp[2:H + 2]                  # (H, W+2, CB)
    s = rs[:, 0:W] + rs[:, 1:W + 1] + rs[:, 2:W + 2]          # (H, W, CB)
    center = xp[1:H + 1, 1:W + 1]                             # (H, W, CB)
    ij = center * 100.0 + (s - center) * (1.0 / float(WIN * WIN - 1))

    # Flatten (H, W, CB) -> (N, CB) into the VMEM scratch with per-row stores
    # (avoids any in-kernel minor-dim relayout reshape).
    for hh in range(H):
        ij_ref[hh * W:(hh + 1) * W, :] = ij[hh]

    # --- Stage 2: per-channel unique-value histogram entropy ---------------
    # counts[i, c] = #{ j : ij[j, c] == ij[i, c] }.  A unique value with count
    # c contributes -p*log2(p) once and appears c times among the elements, so
    # each element contributes -p*log2(p)/c = -(1/n_pad)*log2(p): no divides.
    inv_np = 1.0 / float(n_pad)
    inv_ln2 = 1.0 / math.log(2.0)
    n_col_steps = N // unroll
    n_row_blocks = N // row_tile

    def row_block(rb, ent_acc):
        r0 = pl.multiple_of(rb * row_tile, row_tile)
        blk = ij_ref[pl.ds(r0, row_tile), :]                  # (row_tile, CB)

        def col_step(t, counts):
            base = pl.multiple_of(t * unroll, unroll)
            for u in range(unroll):                           # static unroll
                row = ij_ref[pl.ds(base + u, 1), :]           # (1, CB)
                counts = counts + (blk == row).astype(jnp.float32)
            return counts

        counts = jax.lax.fori_loop(
            0, n_col_steps, col_step,
            jnp.zeros((row_tile, CB), jnp.float32))
        log2p = jnp.log(counts * inv_np) * inv_ln2            # (row_tile, CB)
        return ent_acc + jnp.sum(log2p, axis=0, keepdims=True)

    ent = jax.lax.fori_loop(0, n_row_blocks, row_block,
                            jnp.zeros((1, CB), jnp.float32))  # (1, CB)
    h_ref[...] = (-inv_np * ent).reshape(1, 1, CB)


def cnn_entropy_scores(img, win_w=3, win_h=3):
    """Per-channel ij-histogram entropy, shape (B, C)."""
    assert win_w == WIN and win_h == WIN
    B, C, H, W = img.shape
    BC = B * C
    N = H * W
    ext = WIN // 2
    n_pad = (H + 2 * ext) * (W + 2 * ext)  # new_height*new_width (torch code)

    CB = _channel_block(BC)
    G = BC // CB
    unroll = _pick_unroll(N)
    row_tile = _pick_row_tile(N)

    # Glue: zero padding (== nn.Unfold(padding=1)) + channels-last transpose.
    xp = jnp.pad(img.reshape(BC, H, W).astype(jnp.float32),
                 ((0, 0), (ext, ext), (ext, ext)))
    xcl = jnp.transpose(xp, (1, 2, 0))                        # (H+2, W+2, BC)

    h = pl.pallas_call(
        functools.partial(_fused_kernel, n_pad=n_pad, unroll=unroll,
                          row_tile=row_tile),
        out_shape=jax.ShapeDtypeStruct((G, 1, CB), jnp.float32),
        grid=(G,),
        in_specs=[pl.BlockSpec((H + 2 * ext, W + 2 * ext, CB),
                               lambda i: (0, 0, i))],
        out_specs=pl.BlockSpec((1, 1, CB), lambda i: (i, 0, 0)),
        scratch_shapes=[pltpu.VMEM((N, CB), jnp.float32)],
        compiler_params=pltpu.CompilerParams(
            dimension_semantics=("parallel",)),
    )(xcl)

    return h.reshape(B, C)


def cnn_entropy(img, ratio, win_w=3, win_h=3):
    B, C, H, W = img.shape
    ent = cnn_entropy_scores(img, win_w, win_h)
    # glue: top-k channel selection + gather (torch.topk + index_select)
    k = int(ratio * C)
    _, index = jax.lax.top_k(ent, k)                          # (B, k)
    selected = jnp.take_along_axis(img, index[:, :, None, None], axis=1)
    return selected                                           # (B, k, H, W)


def _entropy_scores_ref(img):
    """Pure-JAX reference of the torch entropy math (for a sanity check)."""
    B, C, H, W = img.shape
    x = jnp.pad(img.reshape(B * C, H, W).astype(jnp.float32),
                ((0, 0), (1, 1), (1, 1)))
    s = jnp.zeros((B * C, H, W), jnp.float32)
    for dy in range(WIN):
        for dx in range(WIN):
            s = s + x[:, dy:dy + H, dx:dx + W]
    center = x[:, 1:1 + H, 1:1 + W]
    ij = (center * 100.0 + (s - center) / 8.0).reshape(B * C, -1)
    counts = jnp.sum(ij[:, :, None] == ij[:, None, :], axis=-1).astype(jnp.float32)
    n_pad = (H + 2) * (W + 2)
    h = jnp.sum(-(1.0 / n_pad) * (jnp.log(counts / n_pad) / jnp.log(2.0)), axis=-1)
    return h.reshape(B, C)


if __name__ == "__main__":
    key = jax.random.PRNGKey(0)
    B, C, H, W = 2, 4, 16, 16
    # Quantize to a few discrete levels so the unique-value counting path
    # actually sees repeated ij values (like real feature maps would).
    img = jnp.round(jax.random.uniform(key, (B, C, H, W)) * 3.0).astype(
        jnp.float32)
    ratio = 0.5

    ent = jax.block_until_ready(cnn_entropy_scores(img))
    ent_ref = jax.block_until_ready(_entropy_scores_ref(img))
    assert jnp.allclose(ent, ent_ref, rtol=1e-4, atol=1e-5)

    out = jax.block_until_ready(cnn_entropy(img, ratio))
    assert out.shape == (B, int(ratio * C), H, W), out.shape
    assert out.dtype == jnp.float32
    print("KERNEL_OK")
</pallas_src>

<mosaic_0001>
module attributes {stable_mosaic.version = 11 : i64} {
  func.func @_fused_kernel(%arg0: i32, %arg1: memref<18x18x8xf32, #tpu.memory_space<vmem>>, %arg2: memref<1x1x8xf32, #tpu.memory_space<vmem>>, %arg3: memref<256x8xf32, #tpu.memory_space<vmem>>) attributes {dimension_semantics = [#tpu.dimension_semantics<parallel>], iteration_bounds = array<i64: 1>, scalar_prefetch = 0 : i64, scratch_operands = 1 : i64, tpu.core_type = #tpu.core_type<tc>, window_params = [{transform_indices = @transform_0, window_bounds = array<i64: 18, 18, 8>}, {transform_indices = @transform_1, window_bounds = array<i64: 1, 1, 8>}]} {
    %c0 = arith.constant 0 : index
    %c0_0 = arith.constant 0 : index
    %c0_1 = arith.constant 0 : index
    %0 = vector.load %arg1[%c0, %c0_0, %c0_1] : memref<18x18x8xf32, #tpu.memory_space<vmem>>, vector<18x18x8xf32>
    %1 = vector.extract_strided_slice %0 {offsets = [0, 0, 0], sizes = [16, 18, 8], strides = [1, 1, 1]} : vector<18x18x8xf32> to vector<16x18x8xf32>
    %2 = vector.extract_strided_slice %0 {offsets = [1, 0, 0], sizes = [16, 18, 8], strides = [1, 1, 1]} : vector<18x18x8xf32> to vector<16x18x8xf32>
    %3 = arith.addf %1, %2 : vector<16x18x8xf32>
    %4 = vector.extract_strided_slice %0 {offsets = [2, 0, 0], sizes = [16, 18, 8], strides = [1, 1, 1]} : vector<18x18x8xf32> to vector<16x18x8xf32>
    %5 = arith.addf %3, %4 : vector<16x18x8xf32>
    %6 = vector.extract_strided_slice %5 {offsets = [0, 0, 0], sizes = [16, 16, 8], strides = [1, 1, 1]} : vector<16x18x8xf32> to vector<16x16x8xf32>
    %7 = vector.extract_strided_slice %5 {offsets = [0, 1, 0], sizes = [16, 16, 8], strides = [1, 1, 1]} : vector<16x18x8xf32> to vector<16x16x8xf32>
    %8 = arith.addf %6, %7 : vector<16x16x8xf32>
    %9 = vector.extract_strided_slice %5 {offsets = [0, 2, 0], sizes = [16, 16, 8], strides = [1, 1, 1]} : vector<16x18x8xf32> to vector<16x16x8xf32>
    %10 = arith.addf %8, %9 : vector<16x16x8xf32>
    %11 = vector.extract_strided_slice %0 {offsets = [1, 1, 0], sizes = [16, 16, 8], strides = [1, 1, 1]} : vector<18x18x8xf32> to vector<16x16x8xf32>
    %cst = arith.constant 1.000000e+02 : f32
    %12 = vector.broadcast %cst : f32 to vector<16x16x8xf32>
    %13 = arith.mulf %11, %12 : vector<16x16x8xf32>
    %14 = arith.subf %10, %11 : vector<16x16x8xf32>
    %cst_2 = arith.constant 1.250000e-01 : f32
    %15 = vector.broadcast %cst_2 : f32 to vector<16x16x8xf32>
    %16 = arith.mulf %14, %15 : vector<16x16x8xf32>
    %17 = arith.addf %13, %16 : vector<16x16x8xf32>
    %18 = vector.extract_strided_slice %17 {offsets = [0, 0, 0], sizes = [1, 16, 8], strides = [1, 1, 1]} : vector<16x16x8xf32> to vector<1x16x8xf32>
    %19 = vector.shape_cast %18 : vector<1x16x8xf32> to vector<16x8xf32>
    %c0_3 = arith.constant 0 : index
    %c0_4 = arith.constant 0 : index
    %20 = vector.load %arg3[%c0_3, %c0_4] : memref<256x8xf32, #tpu.memory_space<vmem>>, vector<16x8xf32>
    tpu.vector_store %arg3[%c0_3, %c0_4], %19 {strides = array<i32>} : memref<256x8xf32, #tpu.memory_space<vmem>>, vector<16x8xf32>,
    %21 = vector.extract_strided_slice %17 {offsets = [1, 0, 0], sizes = [1, 16, 8], strides = [1, 1, 1]} : vector<16x16x8xf32> to vector<1x16x8xf32>
    %22 = vector.shape_cast %21 : vector<1x16x8xf32> to vector<16x8xf32>
    %c16 = arith.constant 16 : index
    %c0_5 = arith.constant 0 : index
    %23 = vector.load %arg3[%c16, %c0_5] : memref<256x8xf32, #tpu.memory_space<vmem>>, vector<16x8xf32>
    tpu.vector_store %arg3[%c16, %c0_5], %22 {strides = array<i32>} : memref<256x8xf32, #tpu.memory_space<vmem>>, vector<16x8xf32>,
    %24 = vector.extract_strided_slice %17 {offsets = [2, 0, 0], sizes = [1, 16, 8], strides = [1, 1, 1]} : vector<16x16x8xf32> to vector<1x16x8xf32>
    %25 = vector.shape_cast %24 : vector<1x16x8xf32> to vector<16x8xf32>
    %c32 = arith.constant 32 : index
    %c0_6 = arith.constant 0 : index
    %26 = vector.load %arg3[%c32, %c0_6] : memref<256x8xf32, #tpu.memory_space<vmem>>, vector<16x8xf32>
    tpu.vector_store %arg3[%c32, %c0_6], %25 {strides = array<i32>} : memref<256x8xf32, #tpu.memory_space<vmem>>, vector<16x8xf32>,
    %27 = vector.extract_strided_slice %17 {offsets = [3, 0, 0], sizes = [1, 16, 8], strides = [1, 1, 1]} : vector<16x16x8xf32> to vector<1x16x8xf32>
    %28 = vector.shape_cast %27 : vector<1x16x8xf32> to vector<16x8xf32>
    %c48 = arith.constant 48 : index
    %c0_7 = arith.constant 0 : index
    %29 = vector.load %arg3[%c48, %c0_7] : memref<256x8xf32, #tpu.memory_space<vmem>>, vector<16x8xf32>
    tpu.vector_store %arg3[%c48, %c0_7], %28 {strides = array<i32>} : memref<256x8xf32, #tpu.memory_space<vmem>>, vector<16x8xf32>,
    %30 = vector.extract_strided_slice %17 {offsets = [4, 0, 0], sizes = [1, 16, 8], strides = [1, 1, 1]} : vector<16x16x8xf32> to vector<1x16x8xf32>
    %31 = vector.shape_cast %30 : vector<1x16x8xf32> to vector<16x8xf32>
    %c64 = arith.constant 64 : index
    %c0_8 = arith.constant 0 : index
    %32 = vector.load %arg3[%c64, %c0_8] : memref<256x8xf32, #tpu.memory_space<vmem>>, vector<16x8xf32>
    tpu.vector_store %arg3[%c64, %c0_8], %31 {strides = array<i32>} : memref<256x8xf32, #tpu.memory_space<vmem>>, vector<16x8xf32>,
    %33 = vector.extract_strided_slice %17 {offsets = [5, 0, 0], sizes = [1, 16, 8], strides = [1, 1, 1]} : vector<16x16x8xf32> to vector<1x16x8xf32>
    %34 = vector.shape_cast %33 : vector<1x16x8xf32> to vector<16x8xf32>
    %c80 = arith.constant 80 : index
    %c0_9 = arith.constant 0 : index
    %35 = vector.load %arg3[%c80, %c0_9] : memref<256x8xf32, #tpu.memory_space<vmem>>, vector<16x8xf32>
    tpu.vector_store %arg3[%c80, %c0_9], %34 {strides = array<i32>} : memref<256x8xf32, #tpu.memory_space<vmem>>, vector<16x8xf32>,
    %36 = vector.extract_strided_slice %17 {offsets = [6, 0, 0], sizes = [1, 16, 8], strides = [1, 1, 1]} : vector<16x16x8xf32> to vector<1x16x8xf32>
    %37 = vector.shape_cast %36 : vector<1x16x8xf32> to vector<16x8xf32>
    %c96 = arith.constant 96 : index
    %c0_10 = arith.constant 0 : index
    %38 = vector.load %arg3[%c96, %c0_10] : memref<256x8xf32, #tpu.memory_space<vmem>>, vector<16x8xf32>
    tpu.vector_store %arg3[%c96, %c0_10], %37 {strides = array<i32>} : memref<256x8xf32, #tpu.memory_space<vmem>>, vector<16x8xf32>,
    %39 = vector.extract_strided_slice %17 {offsets = [7, 0, 0], sizes = [1, 16, 8], strides = [1, 1, 1]} : vector<16x16x8xf32> to vector<1x16x8xf32>
    %40 = vector.shape_cast %39 : vector<1x16x8xf32> to vector<16x8xf32>
    %c112 = arith.constant 112 : index
    %c0_11 = arith.constant 0 : index
    %41 = vector.load %arg3[%c112, %c0_11] : memref<256x8xf32, #tpu.memory_space<vmem>>, vector<16x8xf32>
    tpu.vector_store %arg3[%c112, %c0_11], %40 {strides = array<i32>} : memref<256x8xf32, #tpu.memory_space<vmem>>, vector<16x8xf32>,
    %42 = vector.extract_strided_slice %17 {offsets = [8, 0, 0], sizes = [1, 16, 8], strides = [1, 1, 1]} : vector<16x16x8xf32> to vector<1x16x8xf32>
    %43 = vector.shape_cast %42 : vector<1x16x8xf32> to vector<16x8xf32>
    %c128 = arith.constant 128 : index
    %c0_12 = arith.constant 0 : index
    %44 = vector.load %arg3[%c128, %c0_12] : memref<256x8xf32, #tpu.memory_space<vmem>>, vector<16x8xf32>
    tpu.vector_store %arg3[%c128, %c0_12], %43 {strides = array<i32>} : memref<256x8xf32, #tpu.memory_space<vmem>>, vector<16x8xf32>,
    %45 = vector.extract_strided_slice %17 {offsets = [9, 0, 0], sizes = [1, 16, 8], strides = [1, 1, 1]} : vector<16x16x8xf32> to vector<1x16x8xf32>
    %46 = vector.shape_cast %45 : vector<1x16x8xf32> to vector<16x8xf32>
    %c144 = arith.constant 144 : index
    %c0_13 = arith.constant 0 : index
    %47 = vector.load %arg3[%c144, %c0_13] : memref<256x8xf32, #tpu.memory_space<vmem>>, vector<16x8xf32>
    tpu.vector_store %arg3[%c144, %c0_13], %46 {strides = array<i32>} : memref<256x8xf32, #tpu.memory_space<vmem>>, vector<16x8xf32>,
    %48 = vector.extract_strided_slice %17 {offsets = [10, 0, 0], sizes = [1, 16, 8], strides = [1, 1, 1]} : vector<16x16x8xf32> to vector<1x16x8xf32>
    %49 = vector.shape_cast %48 : vector<1x16x8xf32> to vector<16x8xf32>
    %c160 = arith.constant 160 : index
    %c0_14 = arith.constant 0 : index
    %50 = vector.load %arg3[%c160, %c0_14] : memref<256x8xf32, #tpu.memory_space<vmem>>, vector<16x8xf32>
    tpu.vector_store %arg3[%c160, %c0_14], %49 {strides = array<i32>} : memref<256x8xf32, #tpu.memory_space<vmem>>, vector<16x8xf32>,
    %51 = vector.extract_strided_slice %17 {offsets = [11, 0, 0], sizes = [1, 16, 8], strides = [1, 1, 1]} : vector<16x16x8xf32> to vector<1x16x8xf32>
    %52 = vector.shape_cast %51 : vector<1x16x8xf32> to vector<16x8xf32>
    %c176 = arith.constant 176 : index
    %c0_15 = arith.constant 0 : index
    %53 = vector.load %arg3[%c176, %c0_15] : memref<256x8xf32, #tpu.memory_space<vmem>>, vector<16x8xf32>
    tpu.vector_store %arg3[%c176, %c0_15], %52 {strides = array<i32>} : memref<256x8xf32, #tpu.memory_space<vmem>>, vector<16x8xf32>,
    %54 = vector.extract_strided_slice %17 {offsets = [12, 0, 0], sizes = [1, 16, 8], strides = [1, 1, 1]} : vector<16x16x8xf32> to vector<1x16x8xf32>
    %55 = vector.shape_cast %54 : vector<1x16x8xf32> to vector<16x8xf32>
    %c192 = arith.constant 192 : index
    %c0_16 = arith.constant 0 : index
    %56 = vector.load %arg3[%c192, %c0_16] : memref<256x8xf32, #tpu.memory_space<vmem>>, vector<16x8xf32>
    tpu.vector_store %arg3[%c192, %c0_16], %55 {strides = array<i32>} : memref<256x8xf32, #tpu.memory_space<vmem>>, vector<16x8xf32>,
    %57 = vector.extract_strided_slice %17 {offsets = [13, 0, 0], sizes = [1, 16, 8], strides = [1, 1, 1]} : vector<16x16x8xf32> to vector<1x16x8xf32>
    %58 = vector.shape_cast %57 : vector<1x16x8xf32> to vector<16x8xf32>
    %c208 = arith.constant 208 : index
    %c0_17 = arith.constant 0 : index
    %59 = vector.load %arg3[%c208, %c0_17] : memref<256x8xf32, #tpu.memory_space<vmem>>, vector<16x8xf32>
    tpu.vector_store %arg3[%c208, %c0_17], %58 {strides = array<i32>} : memref<256x8xf32, #tpu.memory_space<vmem>>, vector<16x8xf32>,
    %60 = vector.extract_strided_slice %17 {offsets = [14, 0, 0], sizes = [1, 16, 8], strides = [1, 1, 1]} : vector<16x16x8xf32> to vector<1x16x8xf32>
    %61 = vector.shape_cast %60 : vector<1x16x8xf32> to vector<16x8xf32>
    %c224 = arith.constant 224 : index
    %c0_18 = arith.constant 0 : index
    %62 = vector.load %arg3[%c224, %c0_18] : memref<256x8xf32, #tpu.memory_space<vmem>>, vector<16x8xf32>
    tpu.vector_store %arg3[%c224, %c0_18], %61 {strides = array<i32>} : memref<256x8xf32, #tpu.memory_space<vmem>>, vector<16x8xf32>,
    %63 = vector.extract_strided_slice %17 {offsets = [15, 0, 0], sizes = [1, 16, 8], strides = [1, 1, 1]} : vector<16x16x8xf32> to vector<1x16x8xf32>
    %64 = vector.shape_cast %63 : vector<1x16x8xf32> to vector<16x8xf32>
    %c240 = arith.constant 240 : index
    %c0_19 = arith.constant 0 : index
    %65 = vector.load %arg3[%c240, %c0_19] : memref<256x8xf32, #tpu.memory_space<vmem>>, vector<16x8xf32>
    tpu.vector_store %arg3[%c240, %c0_19], %64 {strides = array<i32>} : memref<256x8xf32, #tpu.memory_space<vmem>>, vector<16x8xf32>,
    %cst_20 = arith.constant 0.000000e+00 : f32
    %66 = vector.broadcast %cst_20 : f32 to vector<1x8xf32>
    %c0_i32 = arith.constant 0 : i32
    %c4_i32 = arith.constant 4 : i32
    %67 = arith.addi %c0_i32, %c4_i32 : i32
    %c1_i32 = arith.constant 1 : i32
    %68 = scf.for %arg4 = %c0_i32 to %67 step %c1_i32 iter_args(%arg5 = %66) -> (vector<1x8xf32>)  : i32 {
      %c64_i32 = arith.constant 64 : i32
      %73 = arith.muli %arg4, %c64_i32 : i32
      %74 = tpu.assume_multiple %73, 64 : i32
      %75 = arith.index_cast %74 : i32 to index
      %c0_26 = arith.constant 0 : index
      %76 = vector.load %arg3[%75, %c0_26] : memref<256x8xf32, #tpu.memory_space<vmem>>, vector<64x8xf32>
      %cst_27 = arith.constant 0.000000e+00 : f32
      %77 = vector.broadcast %cst_27 : f32 to vector<64x8xf32>
      %c0_i32_28 = arith.constant 0 : i32
      %c32_i32 = arith.constant 32 : i32
      %78 = arith.addi %c0_i32_28, %c32_i32 : i32
      %c1_i32_29 = arith.constant 1 : i32
      %79 = scf.for %arg6 = %c0_i32_28 to %78 step %c1_i32_29 iter_args(%arg7 = %77) -> (vector<64x8xf32>)  : i32 {
        %c8_i32 = arith.constant 8 : i32
        %88 = arith.muli %arg6, %c8_i32 : i32
        %89 = tpu.assume_multiple %88, 8 : i32
        %c0_i32_34 = arith.constant 0 : i32
        %90 = arith.addi %89, %c0_i32_34 : i32
        %91 = arith.index_cast %90 : i32 to index
        %c0_35 = arith.constant 0 : index
        %92 = vector.load %arg3[%91, %c0_35] : memref<256x8xf32, #tpu.memory_space<vmem>>, vector<1x8xf32>
        %93 = vector.broadcast %92 : vector<1x8xf32> to vector<64x8xf32>
        %94 = arith.cmpf oeq, %76, %93 : vector<64x8xf32>
        %95 = arith.extui %94 : vector<64x8xi1> to vector<64x8xi32>
        %96 = arith.sitofp %95 : vector<64x8xi32> to vector<64x8xf32>
        %97 = arith.addf %arg7, %96 : vector<64x8xf32>
        %c1_i32_36 = arith.constant 1 : i32
        %98 = arith.addi %89, %c1_i32_36 : i32
        %99 = arith.index_cast %98 : i32 to index
        %c0_37 = arith.constant 0 : index
        %100 = vector.load %arg3[%99, %c0_37] : memref<256x8xf32, #tpu.memory_space<vmem>>, vector<1x8xf32>
        %101 = vector.broadcast %100 : vector<1x8xf32> to vector<64x8xf32>
        %102 = arith.cmpf oeq, %76, %101 : vector<64x8xf32>
        %103 = arith.extui %102 : vector<64x8xi1> to vector<64x8xi32>
        %104 = arith.sitofp %103 : vector<64x8xi32> to vector<64x8xf32>
        %105 = arith.addf %97, %104 : vector<64x8xf32>
        %c2_i32 = arith.constant 2 : i32
        %106 = arith.addi %89, %c2_i32 : i32
        %107 = arith.index_cast %106 : i32 to index
        %c0_38 = arith.constant 0 : index
        %108 = vector.load %arg3[%107, %c0_38] : memref<256x8xf32, #tpu.memory_space<vmem>>, vector<1x8xf32>
        %109 = vector.broadcast %108 : vector<1x8xf32> to vector<64x8xf32>
        %110 = arith.cmpf oeq, %76, %109 : vector<64x8xf32>
        %111 = arith.extui %110 : vector<64x8xi1> to vector<64x8xi32>
        %112 = arith.sitofp %111 : vector<64x8xi32> to vector<64x8xf32>
        %113 = arith.addf %105, %112 : vector<64x8xf32>
        %c3_i32 = arith.constant 3 : i32
        %114 = arith.addi %89, %c3_i32 : i32
        %115 = arith.index_cast %114 : i32 to index
        %c0_39 = arith.constant 0 : index
        %116 = vector.load %arg3[%115, %c0_39] : memref<256x8xf32, #tpu.memory_space<vmem>>, vector<1x8xf32>
        %117 = vector.broadcast %116 : vector<1x8xf32> to vector<64x8xf32>
        %118 = arith.cmpf oeq, %76, %117 : vector<64x8xf32>
        %119 = arith.extui %118 : vector<64x8xi1> to vector<64x8xi32>
        %120 = arith.sitofp %119 : vector<64x8xi32> to vector<64x8xf32>
        %121 = arith.addf %113, %120 : vector<64x8xf32>
        %c4_i32_40 = arith.constant 4 : i32
        %122 = arith.addi %89, %c4_i32_40 : i32
        %123 = arith.index_cast %122 : i32 to index
        %c0_41 = arith.constant 0 : index
        %124 = vector.load %arg3[%123, %c0_41] : memref<256x8xf32, #tpu.memory_space<vmem>>, vector<1x8xf32>
        %125 = vector.broadcast %124 : vector<1x8xf32> to vector<64x8xf32>
        %126 = arith.cmpf oeq, %76, %125 : vector<64x8xf32>
        %127 = arith.extui %126 : vector<64x8xi1> to vector<64x8xi32>
        %128 = arith.sitofp %127 : vector<64x8xi32> to vector<64x8xf32>
        %129 = arith.addf %121, %128 : vector<64x8xf32>
        %c5_i32 = arith.constant 5 : i32
        %130 = arith.addi %89, %c5_i32 : i32
        %131 = arith.index_cast %130 : i32 to index
        %c0_42 = arith.constant 0 : index
        %132 = vector.load %arg3[%131, %c0_42] : memref<256x8xf32, #tpu.memory_space<vmem>>, vector<1x8xf32>
        %133 = vector.broadcast %132 : vector<1x8xf32> to vector<64x8xf32>
        %134 = arith.cmpf oeq, %76, %133 : vector<64x8xf32>
        %135 = arith.extui %134 : vector<64x8xi1> to vector<64x8xi32>
        %136 = arith.sitofp %135 : vector<64x8xi32> to vector<64x8xf32>
        %137 = arith.addf %129, %136 : vector<64x8xf32>
        %c6_i32 = arith.constant 6 : i32
        %138 = arith.addi %89, %c6_i32 : i32
        %139 = arith.index_cast %138 : i32 to index
        %c0_43 = arith.constant 0 : index
        %140 = vector.load %arg3[%139, %c0_43] : memref<256x8xf32, #tpu.memory_space<vmem>>, vector<1x8xf32>
        %141 = vector.broadcast %140 : vector<1x8xf32> to vector<64x8xf32>
        %142 = arith.cmpf oeq, %76, %141 : vector<64x8xf32>
        %143 = arith.extui %142 : vector<64x8xi1> to vector<64x8xi32>
        %144 = arith.sitofp %143 : vector<64x8xi32> to vector<64x8xf32>
        %145 = arith.addf %137, %144 : vector<64x8xf32>
        %c7_i32 = arith.constant 7 : i32
        %146 = arith.addi %89, %c7_i32 : i32
        %147 = arith.index_cast %146 : i32 to index
        %c0_44 = arith.constant 0 : index
        %148 = vector.load %arg3[%147, %c0_44] : memref<256x8xf32, #tpu.memory_space<vmem>>, vector<1x8xf32>
        %149 = vector.broadcast %148 : vector<1x8xf32> to vector<64x8xf32>
        %150 = arith.cmpf oeq, %76, %149 : vector<64x8xf32>
        %151 = arith.extui %150 : vector<64x8xi1> to vector<64x8xi32>
        %152 = arith.sitofp %151 : vector<64x8xi32> to vector<64x8xf32>
        %153 = arith.addf %145, %152 : vector<64x8xf32>
        scf.yield %153 : vector<64x8xf32>
      }
      %c32_i32_30 = arith.constant 32 : i32
      %cst_31 = arith.constant 0.00308641978 : f32
      %80 = vector.broadcast %cst_31 : f32 to vector<64x8xf32>
      %81 = arith.mulf %79, %80 : vector<64x8xf32>
      %82 = math.log %81 : vector<64x8xf32>
      %cst_32 = arith.constant 1.44269502 : f32
      %83 = vector.broadcast %cst_32 : f32 to vector<64x8xf32>
      %84 = arith.mulf %82, %83 : vector<64x8xf32>
      %cst_33 = arith.constant dense<0.000000e+00> : vector<8xf32>
      %85 = vector.multi_reduction <add>, %84, %cst_33 [0] : vector<64x8xf32> to vector<8xf32>
      %86 = vector.shape_cast %85 : vector<8xf32> to vector<1x8xf32>
      %87 = arith.addf %arg5, %86 : vector<1x8xf32>
      scf.yield %87 : vector<1x8xf32>
    }
    %c4_i32_21 = arith.constant 4 : i32
    %cst_22 = arith.constant -0.00308641978 : f32
    %69 = vector.broadcast %cst_22 : f32 to vector<1x8xf32>
    %70 = arith.mulf %69, %68 : vector<1x8xf32>
    %71 = vector.shape_cast %70 : vector<1x8xf32> to vector<1x1x8xf32>
    %c0_23 = arith.constant 0 : index
    %c0_24 = arith.constant 0 : index
    %c0_25 = arith.constant 0 : index
    %72 = vector.load %arg2[%c0_23, %c0_24, %c0_25] : memref<1x1x8xf32, #tpu.memory_space<vmem>>, vector<1x1x8xf32>
    tpu.vector_store %arg2[%c0_23, %c0_24, %c0_25], %71 {strides = array<i32>} : memref<1x1x8xf32, #tpu.memory_space<vmem>>, vector<1x1x8xf32>,
    return
  }
  func.func @transform_0(%arg0: i32) -> (i32, i32, i32) {
    %c0_i32 = arith.constant 0 : i32
    %c0_i32_0 = arith.constant 0 : i32
    %c0_i32_1 = arith.constant 0 : i32
    return %c0_i32, %c0_i32_0, %arg0 : i32, i32, i32
  }
  func.func @transform_1(%arg0: i32) -> (i32, i32, i32) {
    %c0_i32 = arith.constant 0 : i32
    %c0_i32_0 = arith.constant 0 : i32
    %c0_i32_1 = arith.constant 0 : i32
    return %arg0, %c0_i32, %c0_i32_0 : i32, i32, i32
  }
}

</mosaic_0001>

<bundles_post_ra>
// kernel: tpu_custom_call.1
= control target key start
LH: loop header
LB: loop body
LE: loop exit
PB: predicated region body
PF: predicated region fallthrough
CT: control target
= control target key end

     0   :  { %6 = vsyncpa [#allocation4], 0  ;;  %vm207_vm0 = vcmask 1046528   ;;  %vm352_vm1 = vcmask 1045504   ;;  %vm801_vm2 = vcmask 1040384   ;;  %vm946_vm3 = vcmask 64513   ;;  %s2674_s0 = inlined_call_operand.vmem [shape: f32[18,18,8], index: 0, kind: input, shape index: {}]   ;;  %s2675_s1 = inlined_call_operand.hbm [shape: f32[1,1,8], index: 1, kind: output, shape index: {}]  }
   0x1   :  { %v9_v0 = vld [vmem:[%s2674_s0] sm:$0xff]  ;;  %v10_v1 = vld [vmem:[%s2674_s0 + $0x8] sm:$0xff]  ;;  %v12_v2 = vld [vmem:[%s2674_s0 + $0x18] sm:$0xff]  ;;  %vm948_vm4 = vcmask 64512   ;;  %vm950_vm5 = vcmask 57344  }
   0x2   :  { %v13_v3 = vld [vmem:[%s2674_s0 + $0x20] sm:$0xff]  ;;  %v1805_v4 = vld [vmem:[%s2674_s0 + $0x30] sm:$0xff]  ;;  %v1810_v5 = vld [vmem:[%s2674_s0 + $0x38] sm:$0xff]  ;;  %v63_v6 = vadd.f32 %v12_v2, %v9_v0  ;;  %v593_v11 = vrot.slane %v12_v2, 1  ;;  %v1827_v19 = vmul.f32 100.0, %v12_v2 }
   0x3   :  { %v64_v7 = vadd.f32 %v13_v3, %v10_v1  ;;  %v11_v8 = vld [vmem:[%s2674_s0 + $0x10] sm:$0x3]  ;;  %v14_v9 = vld [vmem:[%s2674_s0 + $0x28] sm:$0x3]  ;;  %v66_v10 = vadd.f32 %v1805_v4, %v12_v2  ;;  %v594_v12 = vrot.slane %v13_v3, 1  ;;  %v67_v14 = vadd.f32 %v1810_v5, %v13_v3  ;;  %v1868_v0 = vld [vmem:[%s2674_s0 + $0x60] sm:$0xff] }
   0x4   :  { %v65_v13 = vadd.f32 %v14_v9, %v11_v8  ;;  %v111_v15 = vadd.f32 %v63_v6, %v1805_v4  ;;  %v1825_v17 = vld [vmem:[%s2674_s0 + $0x40] sm:$0x3]  ;;  %v596_v18 = vrot.slane %v14_v9, 1  ;;  %v1830_v21 = vmul.f32 100.0, %v13_v3  ;;  %v1835_v26 = vld [vmem:[%s2674_s0 + $0x48] sm:$0xff]  ;;  %v1841_v30 = vld [vmem:[%s2674_s0 + $0x50] sm:$0xff] }
   0x5   :  { %v112_v16 = vadd.f32 %v64_v7, %v1810_v5  ;;  %v595_v27 = vsel %vm207_vm0, %v593_v11, %v594_v12  ;;  %v114_v31 = vadd.f32 %v66_v10, %v1835_v26  ;;  %v115_v35 = vadd.f32 %v67_v14, %v1841_v30  ;;  %v1858_v52 = vld [vmem:[%s2674_s0 + $0x58] sm:$0x3]  ;;  %v1879_v11 = vld [vmem:[%s2674_s0 + $0x68] sm:$0xff] }
   0x6   :  { %v113_v20 = vadd.f32 %v65_v13, %v1825_v17  ;;  %v208_v22 = vrot.slane %v111_v15, 1  ;;  %v353_v24 = vrot.slane %v111_v15, 2  ;;  %v597_v34 = vsel %vm207_vm0, %v594_v12, %v596_v18 }
   0x7   :  { %v209_v23 = vrot.slane %v112_v16, 1  ;;  %v354_v25 = vrot.slane %v112_v16, 2  ;;  %v213_v39 = vrot.slane %v114_v31, 1  ;;  %v214_v41 = vrot.slane %v115_v35, 1 }
   0x8   :  { %v211_v28 = vrot.slane %v113_v20, 1  ;;  %v356_v29 = vrot.slane %v113_v20, 2  ;;  %v358_v42 = vrot.slane %v114_v31, 2  ;;  %v359_v43 = vrot.slane %v115_v35, 2 }
   0x9   :  { %v210_v32 = vsel %vm207_vm0, %v208_v22, %v209_v23  ;;  %v355_v33 = vsel %vm352_vm1, %v353_v24, %v354_v25  ;;  %v598_v45 = vrot.slane %v1805_v4, 1  ;;  %v599_v46 = vrot.slane %v1810_v5, 1 }
   0xa   :  { %v320_v36 = vadd.f32 %v210_v32, %v111_v15  ;;  %v212_v37 = vsel %vm207_vm0, %v209_v23, %v211_v28  ;;  %v357_v38 = vsel %vm352_vm1, %v354_v25, %v356_v29  ;;  %v68_v47 = vadd.f32 %v1825_v17, %v14_v9 }
   0xb   :  { %v321_v40 = vadd.f32 %v212_v37, %v112_v16  ;;  %v499_v49 = vmul.f32 100.0, %v14_v9  ;;  %v215_v50 = vsel %vm207_vm0, %v213_v39, %v214_v41  ;;  %v360_v51 = vsel %vm352_vm1, %v358_v42, %v359_v43 }
   0xc   :  { %v465_v44 = vadd.f32 %v355_v33, %v320_v36  ;;  %v322_v54 = vadd.f32 %v215_v50, %v114_v31  ;;  %v116_v55 = vadd.f32 %v68_v47, %v1858_v52  ;;  %v600_v57 = vsel %vm207_vm0, %v598_v45, %v599_v46  ;;  %v1914_v50 = vld [vmem:[%s2674_s0 + $0x78] sm:$0xff] }
   0xd   :  { %v466_v48 = vadd.f32 %v357_v38, %v321_v40  ;;  %v601_v58 = vrot.slane %v1825_v17, 1  ;;  %v69_v59 = vadd.f32 %v1835_v26, %v1805_v4  ;;  %v500_v2 = vmul.f32 100.0, %v1805_v4  ;;  %v1899_v38 = vld [vmem:[%s2674_s0 + $0x70] sm:$0x3] }
   0xe   :  { %v705_v53 = vsub.f32 %v465_v44, %v595_v27  ;;  %v467_v61 = vadd.f32 %v360_v51, %v322_v54  ;;  %v216_v62 = vrot.slane %v116_v55, 1  ;;  %v361_v63 = vrot.slane %v116_v55, 2 }
   0xf   :  { %v706_v56 = vsub.f32 %v466_v48, %v597_v34  ;;  %v70_v3 = vadd.f32 %v1841_v30, %v1810_v5  ;;  %v117_v6 = vadd.f32 %v69_v59, %v1868_v0  ;;  %v602_v18 = vsel %vm207_vm0, %v599_v46, %v601_v58 }
  0x10   :  { %v737_v60 = vmul.f32 0.125, %v705_v53  ;;  %v707_v8 = vsub.f32 %v467_v61, %v600_v57  ;;  %v217_v9 = vsel %vm207_vm0, %v214_v41, %v216_v62  ;;  %v362_v10 = vsel %vm352_vm1, %v359_v43, %v361_v63 }
  0x11   :  { %v738_v1 = vmul.f32 0.125, %v706_v56  ;;  %v323_v13 = vadd.f32 %v217_v9, %v115_v35  ;;  %v118_v4 = vadd.f32 %v70_v3, %v1879_v11  ;;  %v218_v14 = vrot.slane %v117_v6, 1 }
  0x12   :  { %v802_v7 = vrot.slane %v737_v60, 7  ;;  %v739_v16 = vmul.f32 0.125, %v707_v8  ;;  %v363_v20 = vrot.slane %v117_v6, 2  ;;  %v603_v31 = vrot.slane %v1835_v26, 1 }
  0x13   :  { %v803_v12 = vrot.slane %v738_v1, 7  ;;  %v468_v24 = vadd.f32 %v362_v10, %v323_v13  ;;  %v219_v25 = vrot.slane %v118_v4, 1  ;;  %v364_v29 = vrot.slane %v118_v4, 2 }
  0x14   :  { %v898_v15 = vadd.f32 %v802_v7, %v1827_v19  ;;  %v805_v28 = vrot.slane %v739_v16, 7  ;;  %v604_v33 = vrot.slane %v1841_v30, 1  ;;  %v71_v34 = vadd.f32 %v1858_v52, %v1825_v17 }
  0x15   :  { %v804_v22 = vsel %vm801_vm2, %v802_v7, %v803_v12  ;;  %v900_v23 = vadd.f32 %v803_v12, %v499_v49  ;;  %v708_v19 = vsub.f32 %v468_v24, %v602_v18  ;;  %v220_v32 = vsel %vm207_vm0, %v218_v14, %v219_v25 }
  0x16   :  { %947 = vst.msk [vmem:[#allocation2 - $0x1] sm:$0xfe] %vm946_vm3, %v898_v15  ;;  %v899_v27 = vadd.f32 %v804_v22, %v1830_v21  ;;  %v901_v35 = vadd.f32 %v805_v28, %v500_v2  ;;  %v502_v36 = vmul.f32 100.0, %v1825_v17  ;;  %v324_v21 = vadd.f32 %v220_v32, %v117_v6 }
  0x17   :  { %951 = vst.msk [vmem:[#allocation2 + $0xf] sm:$0x1] %vm950_vm5, %v900_v23  ;;  %v365_v37 = vsel %vm352_vm1, %v363_v20, %v364_v29  ;;  %v740_v39 = vmul.f32 0.125, %v708_v19  ;;  %v605_v40 = vsel %vm207_vm0, %v603_v31, %v604_v33  ;;  %v119_v41 = vadd.f32 %v71_v34, %v1899_v38  ;;  %v1941_v20 = vld [vmem:[%s2674_s0 + $0x88] sm:$0x3] }
  0x18   :  { %949 = vst.msk [vmem:[#allocation2 + $0x7] sm:$0xff] %vm948_vm4, %v899_v27  ;;  %v606_v42 = vrot.slane %v1858_v52, 1  ;;  %v501_v43 = vmul.f32 100.0, %v1810_v5  ;;  %v469_v17 = vadd.f32 %v365_v37, %v324_v21  ;;  %v72_v44 = vadd.f32 %v1868_v0, %v1835_v26  ;;  %v1919_v5 = vld [vmem:[%s2674_s0 + $0x80] sm:$0xff] }
  0x19   :  { %952 = vst.msk [vmem:[#allocation2 + $0xf] sm:$0xfe] %vm946_vm3, %v901_v35  ;;  %v73_v45 = vadd.f32 %v1879_v11, %v1841_v30  ;;  %v806_v46 = vrot.slane %v740_v39, 7  ;;  %v503_v47 = vmul.f32 100.0, %v1835_v26  ;;  %v221_v48 = vrot.slane %v119_v41, 1 }
  0x1a   :  { %v366_v49 = vrot.slane %v119_v41, 2  ;;  %v709_v51 = vsub.f32 %v469_v17, %v605_v40  ;;  %v607_v53 = vsel %vm207_vm0, %v604_v33, %v606_v42  ;;  %v120_v54 = vadd.f32 %v72_v44, %v1914_v50 }
  0x1b   :  { %v121_v55 = vadd.f32 %v73_v45, %v1919_v5  ;;  %v807_v26 = vsel %vm801_vm2, %v805_v28, %v806_v46  ;;  %v903_v56 = vadd.f32 %v806_v46, %v502_v36  ;;  %v222_v57 = vsel %vm207_vm0, %v219_v25, %v221_v48  ;;  %v1955_v28 = vld [vmem:[%s2674_s0 + $0x90] sm:$0xff] }
  0x1c   :  { %v367_v58 = vsel %vm352_vm1, %v364_v29, %v366_v49  ;;  %v902_v59 = vadd.f32 %v807_v26, %v501_v43  ;;  %v741_v60 = vmul.f32 0.125, %v709_v51  ;;  %v325_v61 = vadd.f32 %v222_v57, %v118_v4 }
  0x1d   :  { %v223_v62 = vrot.slane %v120_v54, 1  ;;  %954 = vst.msk [vmem:[#allocation2 + $0x1f] sm:$0x1] %vm950_vm5, %v903_v56  ;;  %v224_v63 = vrot.slane %v121_v55, 1  ;;  %v368_v1 = vrot.slane %v120_v54, 2  ;;  %v369_v2 = vrot.slane %v121_v55, 2 }
  0x1e   :  { %v608_v3 = vrot.slane %v1868_v0, 1  ;;  %953 = vst.msk [vmem:[#allocation2 + $0x17] sm:$0xff] %vm948_vm4, %v902_v59  ;;  %v808_v6 = vrot.slane %v741_v60, 7  ;;  %v470_v7 = vadd.f32 %v367_v58, %v325_v61  ;;  %v609_v8 = vrot.slane %v1879_v11, 1  ;;  %v1983_v56 = vld [vmem:[%s2674_s0 + $0xa0] sm:$0x3] }
  0x1f   :  { %v74_v9 = vadd.f32 %v1899_v38, %v1858_v52  ;;  %v504_v10 = vmul.f32 100.0, %v1841_v30  ;;  %v225_v12 = vsel %vm207_vm0, %v223_v62, %v224_v63  ;;  %v370_v13 = vsel %vm352_vm1, %v368_v1, %v369_v2 }
  0x20   :  { %v611_v4 = vrot.slane %v1899_v38, 1  ;;  %v904_v14 = vadd.f32 %v808_v6, %v503_v47  ;;  %v710_v15 = vsub.f32 %v470_v7, %v607_v53  ;;  %v505_v16 = vmul.f32 100.0, %v1858_v52 }
  0x21   :  { %v326_v18 = vadd.f32 %v225_v12, %v120_v54  ;;  %v506_v22 = vmul.f32 100.0, %v1868_v0  ;;  %v610_v30 = vsel %vm207_vm0, %v608_v3, %v609_v8  ;;  %v122_v23 = vadd.f32 %v74_v9, %v1941_v20  ;;  %v2002_v9 = vld [vmem:[%s2674_s0 + $0xb0] sm:$0xff] }
  0x22   :  { %v75_v24 = vadd.f32 %v1914_v50, %v1868_v0  ;;  %955 = vst.msk [vmem:[#allocation2 + $0x1f] sm:$0xfe] %vm946_vm3, %v904_v14  ;;  %v742_v25 = vmul.f32 0.125, %v710_v15  ;;  %v1950_v52 = vmul.f32 100.0, %v1879_v11  ;;  %v76_v29 = vadd.f32 %v1919_v5, %v1879_v11  ;;  %v1963_v0 = vld [vmem:[%s2674_s0 + $0x98] sm:$0xff] }
  0x23   :  { %v471_v27 = vadd.f32 %v370_v13, %v326_v18  ;;  %v226_v31 = vrot.slane %v122_v23, 1  ;;  %v371_v19 = vrot.slane %v122_v23, 2  ;;  %v612_v32 = vsel %vm207_vm0, %v609_v8, %v611_v4  ;;  %v1997_v8 = vld [vmem:[%s2674_s0 + $0xa8] sm:$0xff] }
  0x24   :  { %v123_v33 = vadd.f32 %v75_v24, %v1955_v28  ;;  %v809_v34 = vrot.slane %v742_v25, 7  ;;  %v124_v36 = vadd.f32 %v76_v29, %v1963_v0  ;;  %v613_v21 = vrot.slane %v1914_v50, 1 }
  0x25   :  { %v711_v35 = vsub.f32 %v471_v27, %v610_v30  ;;  %v227_v37 = vsel %vm207_vm0, %v224_v63, %v226_v31  ;;  %v372_v11 = vsel %vm352_vm1, %v369_v2, %v371_v19  ;;  %v614_v47 = vrot.slane %v1919_v5, 1 }
  0x26   :  { %v228_v39 = vrot.slane %v123_v33, 1  ;;  %v373_v40 = vrot.slane %v123_v33, 2  ;;  %v810_v41 = vsel %vm801_vm2, %v808_v6, %v809_v34  ;;  %v906_v42 = vadd.f32 %v809_v34, %v505_v16 }
  0x27   :  { %v743_v43 = vmul.f32 0.125, %v711_v35  ;;  %v327_v17 = vadd.f32 %v227_v37, %v121_v55  ;;  %v905_v44 = vadd.f32 %v810_v41, %v504_v10  ;;  %v229_v45 = vrot.slane %v124_v36, 1 }
  0x28   :  { %v374_v46 = vrot.slane %v124_v36, 2  ;;  %957 = vst.msk [vmem:[#allocation2 + $0x2f] sm:$0x1] %vm950_vm5, %v906_v42  ;;  %v508_v51 = vmul.f32 100.0, %v1899_v38  ;;  %v77_v53 = vadd.f32 %v1941_v20, %v1899_v38  ;;  %v509_v26 = vmul.f32 100.0, %v1914_v50 }
  0x29   :  { %v811_v48 = vrot.slane %v743_v43, 7  ;;  %v472_v49 = vadd.f32 %v372_v11, %v327_v17  ;;  %956 = vst.msk [vmem:[#allocation2 + $0x27] sm:$0xff] %vm948_vm4, %v905_v44  ;;  %v230_v54 = vsel %vm207_vm0, %v228_v39, %v229_v45  ;;  %v616_v57 = vrot.slane %v1941_v20, 1 }
  0x2a   :  { %v375_v55 = vsel %vm352_vm1, %v373_v40, %v374_v46  ;;  %v328_v60 = vadd.f32 %v230_v54, %v123_v33  ;;  %v125_v38 = vadd.f32 %v77_v53, %v1983_v56  ;;  %v615_v61 = vsel %vm207_vm0, %v613_v21, %v614_v47 }
  0x2b   :  { %v907_v58 = vadd.f32 %v811_v48, %v506_v22  ;;  %v712_v59 = vsub.f32 %v472_v49, %v612_v32  ;;  %v617_v62 = vsel %vm207_vm0, %v614_v47, %v616_v57  ;;  %v78_v63 = vadd.f32 %v1955_v28, %v1914_v50 }
  0x2c   :  { %v79_v1 = vadd.f32 %v1963_v0, %v1919_v5  ;;  %v473_v3 = vadd.f32 %v375_v55, %v328_v60  ;;  %v231_v6 = vrot.slane %v125_v38, 1  ;;  %v376_v7 = vrot.slane %v125_v38, 2 }
  0x2d   :  { %958 = vst.msk [vmem:[#allocation2 + $0x2f] sm:$0xfe] %vm946_vm3, %v907_v58  ;;  %v744_v2 = vmul.f32 0.125, %v712_v59  ;;  %v126_v50 = vadd.f32 %v78_v63, %v1997_v8  ;;  %v618_v12 = vrot.slane %v1955_v28, 1  ;;  %v619_v13 = vrot.slane %v1963_v0, 1 }
  0x2e   :  { %v127_v10 = vadd.f32 %v79_v1, %v2002_v9  ;;  %v713_v14 = vsub.f32 %v473_v3, %v615_v61  ;;  %v232_v15 = vsel %vm207_vm0, %v229_v45, %v231_v6  ;;  %v377_v16 = vsel %vm352_vm1, %v374_v46, %v376_v7  ;;  %v2035_v45 = vld [vmem:[%s2674_s0 + $0xc0] sm:$0xff] }
  0x2f   :  { %v812_v4 = vrot.slane %v744_v2, 7  ;;  %v329_v18 = vadd.f32 %v232_v15, %v124_v36  ;;  %v233_v22 = vrot.slane %v126_v50, 1  ;;  %v378_v23 = vrot.slane %v126_v50, 2 }
  0x30   :  { %v234_v30 = vrot.slane %v127_v10, 1  ;;  %v745_v27 = vmul.f32 0.125, %v713_v14  ;;  %v379_v29 = vrot.slane %v127_v10, 2  ;;  %v510_v32 = vmul.f32 100.0, %v1919_v5  ;;  %v2024_v5 = vld [vmem:[%s2674_s0 + $0xb8] sm:$0x3] }
  0x31   :  { %v813_v24 = vsel %vm801_vm2, %v811_v48, %v812_v4  ;;  %v909_v25 = vadd.f32 %v812_v4, %v508_v51  ;;  %v474_v19 = vadd.f32 %v377_v16, %v329_v18  ;;  %v80_v21 = vadd.f32 %v1983_v56, %v1941_v20  ;;  %v2043_v51 = vld [vmem:[%s2674_s0 + $0xc8] sm:$0xff]  ;;  %v2063_v16 = vld [vmem:[%s2674_s0 + $0xd0] sm:$0x3] }
  0x32   :  { %v908_v31 = vadd.f32 %v813_v24, %v1950_v52  ;;  %v235_v33 = vsel %vm207_vm0, %v233_v22, %v234_v30  ;;  %v814_v34 = vrot.slane %v745_v27, 7  ;;  %v380_v36 = vsel %vm352_vm1, %v378_v23, %v379_v29 }
  0x33   :  { %960 = vst.msk [vmem:[#allocation2 + $0x3f] sm:$0x1] %vm950_vm5, %v909_v25  ;;  %v330_v35 = vadd.f32 %v235_v33, %v126_v50  ;;  %v714_v37 = vsub.f32 %v474_v19, %v617_v62  ;;  %v511_v11 = vmul.f32 100.0, %v1941_v20  ;;  %v620_v52 = vsel %vm207_vm0, %v618_v12, %v619_v13  ;;  %v2083_v33 = vld [vmem:[%s2674_s0 + $0xe0] sm:$0xff] }
  0x34   :  { %959 = vst.msk [vmem:[#allocation2 + $0x37] sm:$0xff] %vm948_vm4, %v908_v31  ;;  %v621_v39 = vrot.slane %v1983_v56, 1  ;;  %v910_v40 = vadd.f32 %v814_v34, %v509_v26  ;;  %v128_v42 = vadd.f32 %v80_v21, %v2024_v5  ;;  %v81_v43 = vadd.f32 %v1997_v8, %v1955_v28 }
  0x35   :  { %v475_v41 = vadd.f32 %v380_v36, %v330_v35  ;;  %v746_v17 = vmul.f32 0.125, %v714_v37  ;;  %v512_v44 = vmul.f32 100.0, %v1955_v28  ;;  %v82_v46 = vadd.f32 %v2002_v9, %v1963_v0 }
  0x36   :  { %v622_v20 = vsel %vm207_vm0, %v619_v13, %v621_v39  ;;  %961 = vst.msk [vmem:[#allocation2 + $0x3f] sm:$0xfe] %vm946_vm3, %v910_v40  ;;  %v236_v48 = vrot.slane %v128_v42, 1  ;;  %v381_v49 = vrot.slane %v128_v42, 2  ;;  %v129_v28 = vadd.f32 %v81_v43, %v2035_v45 }
  0x37   :  { %v715_v47 = vsub.f32 %v475_v41, %v620_v52  ;;  %v815_v53 = vrot.slane %v746_v17, 7  ;;  %v130_v54 = vadd.f32 %v82_v46, %v2043_v51  ;;  %v623_v55 = vrot.slane %v1997_v8, 1 }
  0x38   :  { %v624_v26 = vrot.slane %v2002_v9, 1  ;;  %v237_v58 = vsel %vm207_vm0, %v234_v30, %v236_v48  ;;  %v382_v59 = vsel %vm352_vm1, %v379_v29, %v381_v49  ;;  %v238_v60 = vrot.slane %v129_v28, 1 }
  0x39   :  { %v747_v57 = vmul.f32 0.125, %v715_v47  ;;  %v816_v38 = vsel %vm801_vm2, %v814_v34, %v815_v53  ;;  %v912_v61 = vadd.f32 %v815_v53, %v511_v11  ;;  %v331_v62 = vadd.f32 %v237_v58, %v127_v10 }
  0x3a   :  { %v239_v63 = vrot.slane %v130_v54, 1  ;;  %v911_v1 = vadd.f32 %v816_v38, %v510_v32  ;;  %v383_v3 = vrot.slane %v129_v28, 2  ;;  %v384_v6 = vrot.slane %v130_v54, 2  ;;  %v2078_v32 = vld [vmem:[%s2674_s0 + $0xd8] sm:$0xff] }
  0x3b   :  { %v817_v2 = vrot.slane %v747_v57, 7  ;;  %963 = vst.msk [vmem:[#allocation2 + $0x4f] sm:$0x1] %vm950_vm5, %v912_v61  ;;  %v476_v7 = vadd.f32 %v382_v59, %v331_v62  ;;  %v513_v50 = vmul.f32 100.0, %v1963_v0  ;;  %v83_v13 = vadd.f32 %v2024_v5, %v1983_v56  ;;  %v2103_v59 = vld [vmem:[%s2674_s0 + $0xe8] sm:$0x3] }
  0x3c   :  { %v240_v12 = vsel %vm207_vm0, %v238_v60, %v239_v63  ;;  %962 = vst.msk [vmem:[#allocation2 + $0x47] sm:$0xff] %vm948_vm4, %v911_v1  ;;  %v514_v10 = vmul.f32 100.0, %v1983_v56  ;;  %v385_v15 = vsel %vm352_vm1, %v383_v3, %v384_v6  ;;  %v625_v0 = vsel %vm207_vm0, %v623_v55, %v624_v26  ;;  %v2116_v3 = vld [vmem:[%s2674_s0 + $0xf0] sm:$0xff] }
  0x3d   :  { %v913_v4 = vadd.f32 %v817_v2, %v512_v44  ;;  %v332_v14 = vadd.f32 %v240_v12, %v129_v28  ;;  %v716_v18 = vsub.f32 %v476_v7, %v622_v20  ;;  %v131_v22 = vadd.f32 %v83_v13, %v2063_v16  ;;  %v2123_v12 = vld [vmem:[%s2674_s0 + $0xf8] sm:$0xff] }
  0x3e   :  { %v626_v30 = vrot.slane %v2024_v5, 1  ;;  %v515_v56 = vmul.f32 100.0, %v1997_v8  ;;  %v84_v24 = vadd.f32 %v2035_v45, %v1997_v8  ;;  %v85_v25 = vadd.f32 %v2043_v51, %v2002_v9 }
  0x3f   :  { %964 = vst.msk [vmem:[#allocation2 + $0x4f] sm:$0xfe] %vm946_vm3, %v913_v4  ;;  %v477_v23 = vadd.f32 %v385_v15, %v332_v14  ;;  %v748_v27 = vmul.f32 0.125, %v716_v18  ;;  %v241_v29 = vrot.slane %v131_v22, 1  ;;  %v386_v31 = vrot.slane %v131_v22, 2 }
  0x40   :  { %v627_v19 = vsel %vm207_vm0, %v624_v26, %v626_v30  ;;  %v132_v8 = vadd.f32 %v84_v24, %v2078_v32  ;;  %v133_v35 = vadd.f32 %v85_v25, %v2083_v33  ;;  %v628_v36 = vrot.slane %v2035_v45, 1 }
  0x41   :  { %v717_v34 = vsub.f32 %v477_v23, %v625_v0  ;;  %v818_v21 = vrot.slane %v748_v27, 7  ;;  %v242_v37 = vsel %vm207_vm0, %v239_v63, %v241_v29  ;;  %v387_v11 = vsel %vm352_vm1, %v384_v6, %v386_v31 }
  0x42   :  { %v629_v52 = vrot.slane %v2043_v51, 1  ;;  %v333_v40 = vadd.f32 %v242_v37, %v130_v54  ;;  %v243_v41 = vrot.slane %v132_v8, 1  ;;  %v244_v42 = vrot.slane %v133_v35, 1 }
  0x43   :  { %v749_v39 = vmul.f32 0.125, %v717_v34  ;;  %v819_v43 = vsel %vm801_vm2, %v817_v2, %v818_v21  ;;  %v915_v17 = vadd.f32 %v818_v21, %v514_v10  ;;  %v388_v44 = vrot.slane %v132_v8, 2 }
  0x44   :  { %v389_v20 = vrot.slane %v133_v35, 2  ;;  %v914_v46 = vadd.f32 %v819_v43, %v513_v50  ;;  %v478_v48 = vadd.f32 %v387_v11, %v333_v40  ;;  %v245_v49 = vsel %vm207_vm0, %v243_v41, %v244_v42 }
  0x45   :  { %v820_v47 = vrot.slane %v749_v39, 7  ;;  %966 = vst.msk [vmem:[#allocation2 + $0x5f] sm:$0x1] %vm950_vm5, %v915_v17  ;;  %v516_v28 = vmul.f32 100.0, %v2002_v9  ;;  %v334_v53 = vadd.f32 %v245_v49, %v132_v8  ;;  %v86_v54 = vadd.f32 %v2063_v16, %v2024_v5  ;;  %v2163_v49 = vld [vmem:[%s2674_s0 + $0x110] sm:$0xff] }
  0x46   :  { %v390_v55 = vsel %vm352_vm1, %v388_v44, %v389_v20  ;;  %965 = vst.msk [vmem:[#allocation2 + $0x57] sm:$0xff] %vm948_vm4, %v914_v46  ;;  %v718_v57 = vsub.f32 %v478_v48, %v627_v19  ;;  %v630_v58 = vsel %vm207_vm0, %v628_v36, %v629_v52  ;;  %v631_v60 = vrot.slane %v2063_v16, 1  ;;  %v2158_v48 = vld [vmem:[%s2674_s0 + $0x108] sm:$0xff] }
  0x47   :  { %v916_v26 = vadd.f32 %v820_v47, %v515_v56  ;;  %v517_v9 = vmul.f32 100.0, %v2024_v5  ;;  %v479_v38 = vadd.f32 %v390_v55, %v334_v53  ;;  %v134_v61 = vadd.f32 %v86_v54, %v2103_v59 }
  0x48   :  { %v87_v62 = vadd.f32 %v2078_v32, %v2035_v45  ;;  %v750_v63 = vmul.f32 0.125, %v718_v57  ;;  %v518_v1 = vmul.f32 100.0, %v2035_v45  ;;  %v632_v2 = vsel %vm207_vm0, %v629_v52, %v631_v60  ;;  %v2143_v52 = vld [vmem:[%s2674_s0 + $0x100] sm:$0x3] }
  0x49   :  { %967 = vst.msk [vmem:[#allocation2 + $0x5f] sm:$0xfe] %vm946_vm3, %v916_v26  ;;  %v88_v5 = vadd.f32 %v2083_v33, %v2043_v51  ;;  %v719_v6 = vsub.f32 %v479_v38, %v630_v58  ;;  %v246_v7 = vrot.slane %v134_v61, 1  ;;  %v391_v50 = vrot.slane %v134_v61, 2 }
  0x4a   :  { %v135_v45 = vadd.f32 %v87_v62, %v2116_v3  ;;  %v821_v13 = vrot.slane %v750_v63, 7  ;;  %v633_v10 = vrot.slane %v2078_v32, 1  ;;  %v634_v14 = vrot.slane %v2083_v33, 1 }
  0x4b   :  { %v136_v4 = vadd.f32 %v88_v5, %v2123_v12  ;;  %v751_v15 = vmul.f32 0.125, %v719_v6  ;;  %v247_v18 = vsel %vm207_vm0, %v244_v42, %v246_v7  ;;  %v392_v0 = vsel %vm352_vm1, %v389_v20, %v391_v50 }
  0x4c   :  { %v248_v22 = vrot.slane %v135_v45, 1  ;;  %v822_v30 = vsel %vm801_vm2, %v820_v47, %v821_v13  ;;  %v918_v23 = vadd.f32 %v821_v13, %v517_v9  ;;  %v335_v56 = vadd.f32 %v247_v18, %v133_v35 }
  0x4d   :  { %v249_v24 = vrot.slane %v136_v4, 1  ;;  %v917_v25 = vadd.f32 %v822_v30, %v516_v28  ;;  %v823_v27 = vrot.slane %v751_v15, 7  ;;  %v393_v29 = vrot.slane %v135_v45, 2 }
  0x4e   :  { %v394_v31 = vrot.slane %v136_v4, 2  ;;  %969 = vst.msk [vmem:[#allocation2 + $0x6f] sm:$0x1] %vm950_vm5, %v918_v23  ;;  %v480_v19 = vadd.f32 %v392_v0, %v335_v56  ;;  %v519_v34 = vmul.f32 100.0, %v2043_v51  ;;  %v89_v36 = vadd.f32 %v2103_v59, %v2063_v16  ;;  %v2183_v0 = vld [vmem:[%s2674_s0 + $0x118] sm:$0x3] }
  0x4f   :  { %v250_v8 = vsel %vm207_vm0, %v248_v22, %v249_v24  ;;  %968 = vst.msk [vmem:[#allocation2 + $0x67] sm:$0xff] %vm948_vm4, %v917_v25  ;;  %v919_v21 = vadd.f32 %v823_v27, %v518_v1  ;;  %v520_v35 = vmul.f32 100.0, %v2063_v16  ;;  %v635_v51 = vsel %vm207_vm0, %v633_v10, %v634_v14 }
  0x50   :  { %v336_v37 = vadd.f32 %v250_v8, %v135_v45  ;;  %v395_v11 = vsel %vm352_vm1, %v393_v29, %v394_v31  ;;  %v720_v39 = vsub.f32 %v480_v19, %v632_v2  ;;  %v137_v40 = vadd.f32 %v89_v36, %v2143_v52  ;;  %v2196_v29 = vld [vmem:[%s2674_s0 + $0x120] sm:$0xff]  ;;  %v2203_v8 = vld [vmem:[%s2674_s0 + $0x128] sm:$0xff] }
  0x51   :  { %v636_v41 = vrot.slane %v2103_v59, 1  ;;  %970 = vst.msk [vmem:[#allocation2 + $0x6f] sm:$0xfe] %vm946_vm3, %v919_v21  ;;  %v521_v16 = vmul.f32 100.0, %v2078_v32  ;;  %v90_v43 = vadd.f32 %v2116_v3, %v2078_v32  ;;  %v91_v17 = vadd.f32 %v2123_v12, %v2083_v33 }
  0x52   :  { %v481_v42 = vadd.f32 %v395_v11, %v336_v37  ;;  %v752_v44 = vmul.f32 0.125, %v720_v39  ;;  %v251_v20 = vrot.slane %v137_v40, 1  ;;  %v396_v46 = vrot.slane %v137_v40, 2 }
  0x53   :  { %v637_v47 = vsel %vm207_vm0, %v634_v14, %v636_v41  ;;  %v138_v32 = vadd.f32 %v90_v43, %v2158_v48  ;;  %v139_v53 = vadd.f32 %v91_v17, %v2163_v49  ;;  %v638_v55 = vrot.slane %v2116_v3, 1 }
  0x54   :  { %v721_v28 = vsub.f32 %v481_v42, %v635_v51  ;;  %v824_v54 = vrot.slane %v752_v44, 7  ;;  %v252_v26 = vsel %vm207_vm0, %v249_v24, %v251_v20  ;;  %v397_v57 = vsel %vm352_vm1, %v394_v31, %v396_v46 }
  0x55   :  { %v639_v58 = vrot.slane %v2123_v12, 1  ;;  %v337_v9 = vadd.f32 %v252_v26, %v136_v4  ;;  %v253_v38 = vrot.slane %v138_v32, 1  ;;  %v254_v61 = vrot.slane %v139_v53, 1 }
  0x56   :  { %v753_v60 = vmul.f32 0.125, %v721_v28  ;;  %v825_v62 = vsel %vm801_vm2, %v823_v27, %v824_v54  ;;  %v921_v63 = vadd.f32 %v824_v54, %v520_v35  ;;  %v398_v1 = vrot.slane %v138_v32, 2 }
  0x57   :  { %v399_v2 = vrot.slane %v139_v53, 2  ;;  %v920_v5 = vadd.f32 %v825_v62, %v519_v34  ;;  %v482_v7 = vadd.f32 %v397_v57, %v337_v9  ;;  %v255_v50 = vsel %vm207_vm0, %v253_v38, %v254_v61 }
  0x58   :  { %v826_v6 = vrot.slane %v753_v60, 7  ;;  %972 = vst.msk [vmem:[#allocation2 + $0x7f] sm:$0x1] %vm950_vm5, %v921_v63  ;;  %v522_v45 = vmul.f32 100.0, %v2083_v33  ;;  %v338_v13 = vadd.f32 %v255_v50, %v138_v32  ;;  %v92_v4 = vadd.f32 %v2143_v52, %v2103_v59  ;;  %v2243_v50 = vld [vmem:[%s2674_s0 + $0x140] sm:$0xff] }
  0x59   :  { %v400_v10 = vsel %vm352_vm1, %v398_v1, %v399_v2  ;;  %971 = vst.msk [vmem:[#allocation2 + $0x77] sm:$0xff] %vm948_vm4, %v920_v5  ;;  %v722_v15 = vsub.f32 %v482_v7, %v637_v47  ;;  %v640_v18 = vsel %vm207_vm0, %v638_v55, %v639_v58  ;;  %v641_v22 = vrot.slane %v2143_v52, 1  ;;  %v2238_v7 = vld [vmem:[%s2674_s0 + $0x138] sm:$0xff] }
  0x5a   :  { %v922_v14 = vadd.f32 %v826_v6, %v521_v16  ;;  %v523_v33 = vmul.f32 100.0, %v2103_v59  ;;  %v483_v30 = vadd.f32 %v400_v10, %v338_v13  ;;  %v140_v23 = vadd.f32 %v92_v4, %v2183_v0 }
  0x5b   :  { %v93_v56 = vadd.f32 %v2158_v48, %v2116_v3  ;;  %v754_v24 = vmul.f32 0.125, %v722_v15  ;;  %v524_v25 = vmul.f32 100.0, %v2116_v3  ;;  %v642_v27 = vsel %vm207_vm0, %v639_v58, %v641_v22  ;;  %v2223_v58 = vld [vmem:[%s2674_s0 + $0x130] sm:$0x3] }
  0x5c   :  { %973 = vst.msk [vmem:[#allocation2 + $0x7f] sm:$0xfe] %vm946_vm3, %v922_v14  ;;  %v94_v59 = vadd.f32 %v2163_v49, %v2123_v12  ;;  %v723_v31 = vsub.f32 %v483_v30, %v640_v18  ;;  %v256_v19 = vrot.slane %v140_v23, 1  ;;  %v401_v34 = vrot.slane %v140_v23, 2 }
  0x5d   :  { %v141_v3 = vadd.f32 %v93_v56, %v2196_v29  ;;  %v827_v36 = vrot.slane %v754_v24, 7  ;;  %v643_v35 = vrot.slane %v2158_v48, 1  ;;  %v644_v37 = vrot.slane %v2163_v49, 1 }
  0x5e   :  { %v142_v21 = vadd.f32 %v94_v59, %v2203_v8  ;;  %v755_v11 = vmul.f32 0.125, %v723_v31  ;;  %v257_v39 = vsel %vm207_vm0, %v254_v61, %v256_v19  ;;  %v402_v51 = vsel %vm352_vm1, %v399_v2, %v401_v34 }
  0x5f   :  { %v258_v40 = vrot.slane %v141_v3, 1  ;;  %v828_v41 = vsel %vm801_vm2, %v826_v6, %v827_v36  ;;  %v924_v42 = vadd.f32 %v827_v36, %v523_v33  ;;  %v339_v16 = vadd.f32 %v257_v39, %v139_v53 }
  0x60   :  { %v259_v43 = vrot.slane %v142_v21, 1  ;;  %v923_v17 = vadd.f32 %v828_v41, %v522_v45  ;;  %v829_v44 = vrot.slane %v755_v11, 7  ;;  %v403_v20 = vrot.slane %v141_v3, 2 }
  0x61   :  { %v404_v46 = vrot.slane %v142_v21, 2  ;;  %975 = vst.msk [vmem:[#allocation2 + $0x8f] sm:$0x1] %vm950_vm5, %v924_v42  ;;  %v484_v47 = vadd.f32 %v402_v51, %v339_v16  ;;  %v525_v28 = vmul.f32 100.0, %v2123_v12  ;;  %v95_v55 = vadd.f32 %v2183_v0, %v2143_v52  ;;  %v2263_v51 = vld [vmem:[%s2674_s0 + $0x148] sm:$0x3] }
  0x62   :  { %v260_v32 = vsel %vm207_vm0, %v258_v40, %v259_v43  ;;  %974 = vst.msk [vmem:[#allocation2 + $0x87] sm:$0xff] %vm948_vm4, %v923_v17  ;;  %v925_v54 = vadd.f32 %v829_v44, %v524_v25  ;;  %v526_v53 = vmul.f32 100.0, %v2143_v52  ;;  %v645_v12 = vsel %vm207_vm0, %v643_v35, %v644_v37 }
  0x63   :  { %v340_v26 = vadd.f32 %v260_v32, %v141_v3  ;;  %v405_v57 = vsel %vm352_vm1, %v403_v20, %v404_v46  ;;  %v724_v60 = vsub.f32 %v484_v47, %v642_v27  ;;  %v143_v9 = vadd.f32 %v95_v55, %v2223_v58  ;;  %v2276_v20 = vld [vmem:[%s2674_s0 + $0x150] sm:$0xff]  ;;  %v2283_v32 = vld [vmem:[%s2674_s0 + $0x158] sm:$0xff] }
  0x64   :  { %v646_v38 = vrot.slane %v2183_v0, 1  ;;  %976 = vst.msk [vmem:[#allocation2 + $0x8f] sm:$0xfe] %vm946_vm3, %v925_v54  ;;  %v527_v52 = vmul.f32 100.0, %v2158_v48  ;;  %v96_v62 = vadd.f32 %v2196_v29, %v2158_v48  ;;  %v97_v63 = vadd.f32 %v2203_v8, %v2163_v49 }
  0x65   :  { %v485_v61 = vadd.f32 %v405_v57, %v340_v26  ;;  %v756_v1 = vmul.f32 0.125, %v724_v60  ;;  %v261_v2 = vrot.slane %v143_v9, 1  ;;  %v406_v5 = vrot.slane %v143_v9, 2 }
  0x66   :  { %v647_v6 = vsel %vm207_vm0, %v644_v37, %v646_v38  ;;  %v144_v48 = vadd.f32 %v96_v62, %v2238_v7  ;;  %v145_v13 = vadd.f32 %v97_v63, %v2243_v50  ;;  %v648_v10 = vrot.slane %v2196_v29, 1 }
  0x67   :  { %v725_v45 = vsub.f32 %v485_v61, %v645_v12  ;;  %v830_v4 = vrot.slane %v756_v1, 7  ;;  %v262_v14 = vsel %vm207_vm0, %v259_v43, %v261_v2  ;;  %v407_v15 = vsel %vm352_vm1, %v404_v46, %v406_v5 }
  0x68   :  { %v649_v18 = vrot.slane %v2203_v8, 1  ;;  %v341_v33 = vadd.f32 %v262_v14, %v142_v21  ;;  %v263_v30 = vrot.slane %v144_v48, 1  ;;  %v264_v23 = vrot.slane %v145_v13, 1 }
  0x69   :  { %v757_v22 = vmul.f32 0.125, %v725_v45  ;;  %v831_v56 = vsel %vm801_vm2, %v829_v44, %v830_v4  ;;  %v927_v24 = vadd.f32 %v830_v4, %v526_v53  ;;  %v408_v25 = vrot.slane %v144_v48, 2 }
  0x6a   :  { %v409_v27 = vrot.slane %v145_v13, 2  ;;  %v926_v59 = vadd.f32 %v831_v56, %v525_v28  ;;  %v486_v19 = vadd.f32 %v407_v15, %v341_v33  ;;  %v265_v34 = vsel %vm207_vm0, %v263_v30, %v264_v23 }
  0x6b   :  { %v832_v31 = vrot.slane %v757_v22, 7  ;;  %978 = vst.msk [vmem:[#allocation2 + $0x9f] sm:$0x1] %vm950_vm5, %v927_v24  ;;  %v528_v3 = vmul.f32 100.0, %v2163_v49  ;;  %v342_v36 = vadd.f32 %v265_v34, %v144_v48  ;;  %v98_v21 = vadd.f32 %v2223_v58, %v2183_v0  ;;  %v2323_v34 = vld [vmem:[%s2674_s0 + $0x170] sm:$0xff] }
  0x6c   :  { %v410_v35 = vsel %vm352_vm1, %v408_v25, %v409_v27  ;;  %977 = vst.msk [vmem:[#allocation2 + $0x97] sm:$0xff] %vm948_vm4, %v926_v59  ;;  %v726_v11 = vsub.f32 %v486_v19, %v647_v6  ;;  %v650_v39 = vsel %vm207_vm0, %v648_v10, %v649_v18  ;;  %v651_v40 = vrot.slane %v2223_v58, 1  ;;  %v2318_v19 = vld [vmem:[%s2674_s0 + $0x168] sm:$0xff] }
  0x6d   :  { %v928_v37 = vadd.f32 %v832_v31, %v527_v52  ;;  %v529_v49 = vmul.f32 100.0, %v2183_v0  ;;  %v487_v41 = vadd.f32 %v410_v35, %v342_v36  ;;  %v146_v42 = vadd.f32 %v98_v21, %v2263_v51 }
  0x6e   :  { %v99_v16 = vadd.f32 %v2238_v7, %v2196_v29  ;;  %v758_v43 = vmul.f32 0.125, %v726_v11  ;;  %v530_v17 = vmul.f32 100.0, %v2196_v29  ;;  %v652_v44 = vsel %vm207_vm0, %v649_v18, %v651_v40  ;;  %v2303_v18 = vld [vmem:[%s2674_s0 + $0x160] sm:$0x3] }
  0x6f   :  { %979 = vst.msk [vmem:[#allocation2 + $0x9f] sm:$0xfe] %vm946_vm3, %v928_v37  ;;  %v100_v0 = vadd.f32 %v2243_v50, %v2203_v8  ;;  %v727_v46 = vsub.f32 %v487_v41, %v650_v39  ;;  %v266_v47 = vrot.slane %v146_v42, 1  ;;  %v411_v28 = vrot.slane %v146_v42, 2 }
  0x70   :  { %v147_v29 = vadd.f32 %v99_v16, %v2276_v20  ;;  %v833_v55 = vrot.slane %v758_v43, 7  ;;  %v653_v53 = vrot.slane %v2238_v7, 1  ;;  %v654_v26 = vrot.slane %v2243_v50, 1 }
  0x71   :  { %v148_v54 = vadd.f32 %v100_v0, %v2283_v32  ;;  %v759_v57 = vmul.f32 0.125, %v727_v46  ;;  %v267_v60 = vsel %vm207_vm0, %v264_v23, %v266_v47  ;;  %v412_v12 = vsel %vm352_vm1, %v409_v27, %v411_v28 }
  0x72   :  { %v268_v9 = vrot.slane %v147_v29, 1  ;;  %v834_v38 = vsel %vm801_vm2, %v832_v31, %v833_v55  ;;  %v930_v61 = vadd.f32 %v833_v55, %v529_v49  ;;  %v343_v52 = vadd.f32 %v267_v60, %v145_v13 }
  0x73   :  { %v269_v62 = vrot.slane %v148_v54, 1  ;;  %v929_v63 = vadd.f32 %v834_v38, %v528_v3  ;;  %v835_v1 = vrot.slane %v759_v57, 7  ;;  %v413_v2 = vrot.slane %v147_v29, 2 }
  0x74   :  { %v414_v5 = vrot.slane %v148_v54, 2  ;;  %981 = vst.msk [vmem:[#allocation2 + $0xaf] sm:$0x1] %vm950_vm5, %v930_v61  ;;  %v488_v6 = vadd.f32 %v412_v12, %v343_v52  ;;  %v531_v45 = vmul.f32 100.0, %v2203_v8  ;;  %v101_v10 = vadd.f32 %v2263_v51, %v2223_v58  ;;  %v2343_v12 = vld [vmem:[%s2674_s0 + $0x178] sm:$0x3] }
  0x75   :  { %v270_v48 = vsel %vm207_vm0, %v268_v9, %v269_v62  ;;  %980 = vst.msk [vmem:[#allocation2 + $0xa7] sm:$0xff] %vm948_vm4, %v929_v63  ;;  %v931_v4 = vadd.f32 %v835_v1, %v530_v17  ;;  %v532_v13 = vmul.f32 100.0, %v2223_v58  ;;  %v655_v8 = vsel %vm207_vm0, %v653_v53, %v654_v26 }
  0x76   :  { %v344_v14 = vadd.f32 %v270_v48, %v147_v29  ;;  %v415_v15 = vsel %vm352_vm1, %v413_v2, %v414_v5  ;;  %v728_v22 = vsub.f32 %v488_v6, %v652_v44  ;;  %v149_v33 = vadd.f32 %v101_v10, %v2303_v18  ;;  %v2356_v2 = vld [vmem:[%s2674_s0 + $0x180] sm:$0xff]  ;;  %v2363_v48 = vld [vmem:[%s2674_s0 + $0x188] sm:$0xff] }
  0x77   :  { %v656_v30 = vrot.slane %v2263_v51, 1  ;;  %982 = vst.msk [vmem:[#allocation2 + $0xaf] sm:$0xfe] %vm946_vm3, %v931_v4  ;;  %v533_v58 = vmul.f32 100.0, %v2238_v7  ;;  %v102_v56 = vadd.f32 %v2276_v20, %v2238_v7  ;;  %v103_v24 = vadd.f32 %v2283_v32, %v2243_v50 }
  0x78   :  { %v489_v23 = vadd.f32 %v415_v15, %v344_v14  ;;  %v760_v25 = vmul.f32 0.125, %v728_v22  ;;  %v271_v27 = vrot.slane %v149_v33, 1  ;;  %v416_v59 = vrot.slane %v149_v33, 2 }
  0x79   :  { %v657_v31 = vsel %vm207_vm0, %v654_v26, %v656_v30  ;;  %v150_v7 = vadd.f32 %v102_v56, %v2318_v19  ;;  %v151_v36 = vadd.f32 %v103_v24, %v2323_v34  ;;  %v658_v35 = vrot.slane %v2276_v20, 1 }
  0x7a   :  { %v729_v3 = vsub.f32 %v489_v23, %v655_v8  ;;  %v836_v21 = vrot.slane %v760_v25, 7  ;;  %v272_v37 = vsel %vm207_vm0, %v269_v62, %v271_v27  ;;  %v417_v11 = vsel %vm352_vm1, %v414_v5, %v416_v59 }
  0x7b   :  { %v659_v39 = vrot.slane %v2283_v32, 1  ;;  %v345_v49 = vadd.f32 %v272_v37, %v148_v54  ;;  %v273_v41 = vrot.slane %v150_v7, 1  ;;  %v274_v42 = vrot.slane %v151_v36, 1 }
  0x7c   :  { %v761_v40 = vmul.f32 0.125, %v729_v3  ;;  %v837_v16 = vsel %vm801_vm2, %v835_v1, %v836_v21  ;;  %v933_v43 = vadd.f32 %v836_v21, %v532_v13  ;;  %v418_v17 = vrot.slane %v150_v7, 2 }
  0x7d   :  { %v419_v44 = vrot.slane %v151_v36, 2  ;;  %v932_v0 = vadd.f32 %v837_v16, %v531_v45  ;;  %v490_v47 = vadd.f32 %v417_v11, %v345_v49  ;;  %v275_v28 = vsel %vm207_vm0, %v273_v41, %v274_v42 }
  0x7e   :  { %v838_v46 = vrot.slane %v761_v40, 7  ;;  %984 = vst.msk [vmem:[#allocation2 + $0xbf] sm:$0x1] %vm950_vm5, %v933_v43  ;;  %v534_v29 = vmul.f32 100.0, %v2243_v50  ;;  %v346_v55 = vadd.f32 %v275_v28, %v150_v7  ;;  %v104_v54 = vadd.f32 %v2303_v18, %v2263_v51 }
  0x7f   :  { %v420_v53 = vsel %vm352_vm1, %v418_v17, %v419_v44  ;;  %983 = vst.msk [vmem:[#allocation2 + $0xb7] sm:$0xff] %vm948_vm4, %v932_v0  ;;  %v730_v57 = vsub.f32 %v490_v47, %v657_v31  ;;  %v660_v60 = vsel %vm207_vm0, %v658_v35, %v659_v39  ;;  %v661_v9 = vrot.slane %v2303_v18, 1 }
  0x80   :  { %v934_v26 = vadd.f32 %v838_v46, %v533_v58  ;;  %v535_v50 = vmul.f32 100.0, %v2263_v51  ;;  %v491_v38 = vadd.f32 %v420_v53, %v346_v55  ;;  %v152_v61 = vadd.f32 %v104_v54, %v2343_v12 }
  0x81   :  { %v105_v52 = vadd.f32 %v2318_v19, %v2276_v20  ;;  %v762_v62 = vmul.f32 0.125, %v730_v57  ;;  %v536_v63 = vmul.f32 100.0, %v2276_v20  ;;  %v662_v1 = vsel %vm207_vm0, %v659_v39, %v661_v9  ;;  %v2383_v39 = vld [vmem:[%s2674_s0 + $0x190] sm:$0x3] }
  0x82   :  { %985 = vst.msk [vmem:[#allocation2 + $0xbf] sm:$0xfe] %vm946_vm3, %v934_v26  ;;  %v106_v51 = vadd.f32 %v2323_v34, %v2283_v32  ;;  %v731_v5 = vsub.f32 %v491_v38, %v660_v60  ;;  %v276_v6 = vrot.slane %v152_v61, 1  ;;  %v421_v45 = vrot.slane %v152_v61, 2 }
  0x83   :  { %v153_v20 = vadd.f32 %v105_v52, %v2356_v2  ;;  %v839_v10 = vrot.slane %v762_v62, 7  ;;  %v663_v13 = vrot.slane %v2318_v19, 1  ;;  %v664_v14 = vrot.slane %v2323_v34, 1 }
  0x84   :  { %v154_v4 = vadd.f32 %v106_v51, %v2363_v48  ;;  %v763_v15 = vmul.f32 0.125, %v731_v5  ;;  %v277_v22 = vsel %vm207_vm0, %v274_v42, %v276_v6  ;;  %v422_v8 = vsel %vm352_vm1, %v419_v44, %v421_v45  ;;  %v60_v42 = vld [vmem:[%s2674_s0 + $0x198] sm:$0xff] }
  0x85   :  { %v278_v33 = vrot.slane %v153_v20, 1  ;;  %v840_v30 = vsel %vm801_vm2, %v838_v46, %v839_v10  ;;  %v936_v23 = vadd.f32 %v839_v10, %v535_v50  ;;  %v347_v58 = vadd.f32 %v277_v22, %v151_v36 }
  0x86   :  { %v279_v56 = vrot.slane %v154_v4, 1  ;;  %v935_v24 = vadd.f32 %v840_v30, %v534_v29  ;;  %v841_v25 = vrot.slane %v763_v15, 7  ;;  %v423_v27 = vrot.slane %v153_v20, 2 }
  0x87   :  { %v424_v59 = vrot.slane %v154_v4, 2  ;;  %987 = vst.msk [vmem:[#allocation2 + $0xcf] sm:$0x1] %vm950_vm5, %v936_v23  ;;  %v492_v31 = vadd.f32 %v422_v8, %v347_v58  ;;  %v537_v3 = vmul.f32 100.0, %v2283_v32  ;;  %v107_v35 = vadd.f32 %v2343_v12, %v2303_v18 }
  0x88   :  { %v280_v7 = vsel %vm207_vm0, %v278_v33, %v279_v56  ;;  %986 = vst.msk [vmem:[#allocation2 + $0xc7] sm:$0xff] %vm948_vm4, %v935_v24  ;;  %v937_v21 = vadd.f32 %v841_v25, %v536_v63  ;;  %v538_v36 = vmul.f32 100.0, %v2303_v18  ;;  %v665_v32 = vsel %vm207_vm0, %v663_v13, %v664_v14  ;;  %v61_v18 = vld [vmem:[%s2674_s0 + $0x1a0] sm:$0xff] }
  0x89   :  { %v348_v37 = vadd.f32 %v280_v7, %v153_v20  ;;  %v425_v11 = vsel %vm352_vm1, %v423_v27, %v424_v59  ;;  %v732_v40 = vsub.f32 %v492_v31, %v662_v1  ;;  %v155_v49 = vadd.f32 %v107_v35, %v2383_v39  ;;  %v62_v20 = vld [vmem:[%s2674_s0 + $0x1a8] sm:$0x3]  ;;  %s2435_s0 = smov 0  }
  0x8a   :  { %v666_v41 = vrot.slane %v2343_v12, 1  ;;  %988 = vst.msk [vmem:[#allocation2 + $0xcf] sm:$0xfe] %vm946_vm3, %v937_v21  ;;  %v539_v43 = vmul.f32 100.0, %v2318_v19  ;;  %v108_v17 = vadd.f32 %v2356_v2, %v2318_v19  ;;  %v109_v44 = vadd.f32 %v2363_v48, %v2323_v34 }
  0x8b   :  { %v493_v16 = vadd.f32 %v425_v11, %v348_v37  ;;  %v764_v0 = vmul.f32 0.125, %v732_v40  ;;  %v281_v46 = vrot.slane %v155_v49, 1  ;;  %v426_v47 = vrot.slane %v155_v49, 2 }
  0x8c   :  { %v667_v28 = vsel %vm207_vm0, %v664_v14, %v666_v41  ;;  %v156_v55 = vadd.f32 %v108_v17, %v60_v42  ;;  %v157_v53 = vadd.f32 %v109_v44, %v61_v18  ;;  %v668_v54 = vrot.slane %v2356_v2, 1 }
  0x8d   :  { %v733_v29 = vsub.f32 %v493_v16, %v665_v32  ;;  %v842_v26 = vrot.slane %v764_v0, 7  ;;  %v282_v57 = vsel %vm207_vm0, %v279_v56, %v281_v46  ;;  %v427_v60 = vsel %vm352_vm1, %v424_v59, %v426_v47 }
  0x8e   :  { %v669_v19 = vrot.slane %v2363_v48, 1  ;;  %v349_v50 = vadd.f32 %v282_v57, %v154_v4  ;;  %v283_v38 = vrot.slane %v156_v55, 1  ;;  %v284_v61 = vrot.slane %v157_v53, 1 }
  0x8f   :  { %v765_v9 = vmul.f32 0.125, %v733_v29  ;;  %v843_v52 = vsel %vm801_vm2, %v841_v25, %v842_v26  ;;  %v939_v62 = vadd.f32 %v842_v26, %v538_v36  ;;  %v428_v63 = vrot.slane %v156_v55, 2 }
  0x90   :  { %v429_v1 = vrot.slane %v157_v53, 2  ;;  %v938_v51 = vadd.f32 %v843_v52, %v537_v3  ;;  %v494_v6 = vadd.f32 %v427_v60, %v349_v50  ;;  %v285_v45 = vsel %vm207_vm0, %v283_v38, %v284_v61 }
  0x91   :  { %v844_v5 = vrot.slane %v765_v9, 7  ;;  %990 = vst.msk [vmem:[#allocation2 + $0xdf] sm:$0x1] %vm950_vm5, %v939_v62  ;;  %v350_v10 = vadd.f32 %v285_v45, %v156_v55  ;;  %v110_v13 = vadd.f32 %v2383_v39, %v2343_v12  ;;  %v670_v22 = vsel %vm207_vm0, %v668_v54, %v669_v19 }
  0x92   :  { %v430_v4 = vsel %vm352_vm1, %v428_v63, %v429_v1  ;;  %989 = vst.msk [vmem:[#allocation2 + $0xd7] sm:$0xff] %vm948_vm4, %v938_v51  ;;  %v734_v15 = vsub.f32 %v494_v6, %v667_v28  ;;  %v540_v30 = vmul.f32 100.0, %v2323_v34  ;;  %v541_v58 = vmul.f32 100.0, %v2343_v12 }
  0x93   :  { %v940_v14 = vadd.f32 %v844_v5, %v539_v43  ;;  %v495_v8 = vadd.f32 %v430_v4, %v350_v10  ;;  %v158_v33 = vadd.f32 %v110_v13, %v62_v20  ;;  %v671_v27 = vrot.slane %v2383_v39, 1 }
  0x94   :  { %v766_v23 = vmul.f32 0.125, %v734_v15  ;;  %v542_v31 = vmul.f32 100.0, %v2356_v2  ;;  %v544_v41 = vmul.f32 100.0, %v2383_v39  ;;  %v543_v42 = vmul.f32 100.0, %v2363_v48 }
  0x95   :  { %991 = vst.msk [vmem:[#allocation2 + $0xdf] sm:$0xfe] %vm946_vm3, %v940_v14  ;;  %v735_v56 = vsub.f32 %v495_v8, %v670_v22  ;;  %v286_v24 = vrot.slane %v158_v33, 1  ;;  %v431_v25 = vrot.slane %v158_v33, 2  ;;  %v672_v12 = vsel %vm207_vm0, %v669_v19, %v671_v27 }
  0x96   :  { %v845_v59 = vrot.slane %v766_v23, 7  ;;  %v2433_v44 = vmov 0.0  }
  0x97   :  { %v767_v3 = vmul.f32 0.125, %v735_v56  ;;  %v287_v7 = vsel %vm207_vm0, %v284_v61, %v286_v24  ;;  %v432_v35 = vsel %vm352_vm1, %v429_v1, %v431_v25 }
  0x98   :  { %v846_v21 = vsel %vm801_vm2, %v844_v5, %v845_v59  ;;  %v942_v36 = vadd.f32 %v845_v59, %v541_v58  ;;  %v351_v34 = vadd.f32 %v287_v7, %v157_v53 }
  0x99   :  { %v941_v37 = vadd.f32 %v846_v21, %v540_v30  ;;  %v847_v11 = vrot.slane %v767_v3, 7 }
  0x9a   :  { %993 = vst.msk [vmem:[#allocation2 + $0xef] sm:$0x1] %vm950_vm5, %v942_v36  ;;  %v496_v40 = vadd.f32 %v432_v35, %v351_v34 }
  0x9b   :  { %992 = vst.msk [vmem:[#allocation2 + $0xe7] sm:$0xff] %vm948_vm4, %v941_v37  ;;  %v943_v32 = vadd.f32 %v847_v11, %v542_v31 }
  0x9c   :  { %v736_v2 = vsub.f32 %v496_v40, %v672_v12 }
  0x9d   :  { %994 = vst.msk [vmem:[#allocation2 + $0xef] sm:$0xfe] %vm946_vm3, %v943_v32 }
  0x9e   :  { %v768_v49 = vmul.f32 0.125, %v736_v2 }
  0xa0   :  { %v848_v18 = vrot.slane %v768_v49, 7 }
  0xa2   :  { %v849_v16 = vsel %vm801_vm2, %v847_v11, %v848_v18  ;;  %v945_v43 = vadd.f32 %v848_v18, %v544_v41 }
  0xa3   :  { %v944_v17 = vadd.f32 %v849_v16, %v543_v42 }
  0xa4   :  { %996 = vst.msk [vmem:[#allocation2 + $0xff] sm:$0x1] %vm950_vm5, %v945_v43 }
  0xa5   :  { %995 = vst.msk [vmem:[#allocation2 + $0xf7] sm:$0xff] %vm948_vm4, %v944_v17 }
  0xa6 LB: > { %s1472_s27 = sshll.u32 %s1740_s0, 6  ;;  %v2460_v53 = vmov 0.0   ;;  %v2462_v54 = vmov 0.0   ;;  %v2464_v26 = vmov 0.0   ;;  %v2466_v57 = vmov 0.0   ;;  %s2476_s29 = smov 0   ;;  %s1740_s0 = sphi %s2435_s0, %s1002_s0   ;;  %v1736_v44 = vphi %v2433_v44, %v2684_v44  }
  0xa7   : > { %s1005_s28 = scalar_lea.vmem [#allocation2], %s1472_s27  ;;  %v2468_v60 = vmov 0.0   ;;  %v2470_v19 = vmov 0.0   ;;  %v2472_v9 = vmov 0.0   ;;  %v2474_v50 = vmov 0.0  }
  0xac   : > { %v2444_v48 = vld [vmem:[%s1005_s28] sm:$0xff]  ;;  %v2446_v39 = vld [vmem:[%s1005_s28 + $0x8] sm:$0xff]  ;;  %v2448_v0 = vld [vmem:[%s1005_s28 + $0x10] sm:$0xff] }
  0xad   : > { %v2450_v46 = vld [vmem:[%s1005_s28 + $0x18] sm:$0xff]  ;;  %v2452_v47 = vld [vmem:[%s1005_s28 + $0x20] sm:$0xff]  ;;  %v2454_v28 = vld [vmem:[%s1005_s28 + $0x28] sm:$0xff] }
  0xae   : > { %v2456_v29 = vld [vmem:[%s1005_s28 + $0x30] sm:$0xff]  ;;  %v2458_v55 = vld [vmem:[%s1005_s28 + $0x38] sm:$0xff] }
  0xaf LB: >> { %s1473_s30 = sshll.u32 %s1776_s29, 3  ;;  %v1778_v61 = vmov 0.0   ;;  %s1019_s29 = sadd.s32 1, %s1776_s29   ;;  %s1776_s29 = sphi %s2476_s29, %s1019_s29   ;;  %v1772_v50 = vphi %v2474_v50, %v2683_v50   ;;  %v1768_v9 = vphi %v2472_v9, %v2682_v9   ;;  %v1764_v19 = vphi %v2470_v19, %v2681_v19   ;;  %v1760_v60 = vphi %v2468_v60, %v2680_v60   ;;  %v1756_v57 = vphi %v2466_v57, %v2679_v57   ;;  %v1752_v26 = vphi %v2464_v26, %v2678_v26   ;;  %v1748_v54 = vphi %v2462_v54, %v2677_v54   ;;  %v1744_v53 = vphi %v2460_v53, %v2676_v53  }
  0xb0   : >> { %s2490_s2 = scalar_lea.vmem [#allocation2], %s1473_s30  ;;  %p1016_p0 = scmp.ge.s32.totalorder %s1019_s29, 32  }
  0xb1   : >> { %v1474_v38 = vld [vmem:[%s2490_s2] ss:$0 sm:$0xff]  ;;  %v1485_v20 = vld [vmem:[%s2490_s2 + $0x1] ss:$0 sm:$0xff]  ;;  %v1496_v31 = vld [vmem:[%s2490_s2 + $0x2] ss:$0 sm:$0xff] }
  0xb2   : >> { %vm1035_vm6 = vcmp.eq.f32.partialorder %v2444_v48, %v1474_v38  ;;  %vm1036_vm7 = vcmp.eq.f32.partialorder %v2446_v39, %v1474_v38  ;;  %vm1037_vm8 = vcmp.eq.f32.partialorder %v2448_v0, %v1474_v38  ;;  %vm1038_vm9 = vcmp.eq.f32.partialorder %v2450_v46, %v1474_v38  ;;  %v1507_v16 = vld [vmem:[%s2490_s2 + $0x3] ss:$0 sm:$0xff]  ;;  %s1002_s0 = sadd.s32 (%p1016_p0), 1, %s1740_s0  }
  0xb3   : >> { %vm1039_vm10 = vcmp.eq.f32.partialorder %v2452_v47, %v1474_v38  ;;  %vm1040_vm11 = vcmp.eq.f32.partialorder %v2454_v28, %v1474_v38  ;;  %vm1041_vm12 = vcmp.eq.f32.partialorder %v2456_v29, %v1474_v38  ;;  %vm1042_vm13 = vcmp.eq.f32.partialorder %v2458_v55, %v1474_v38  ;;  %p999_p1 = scmp.ge.s32.totalorder (%p1016_p0), %s1002_s0, 4  }
  0xb4   : >> { %v1475_v52 = vsel %vm1035_vm6, 1.0, %v1778_v61  ;;  %v1476_v62 = vsel %vm1036_vm7, 1.0, %v1778_v61  ;;  %v1477_v63 = vsel %vm1037_vm8, 1.0, %v1778_v61  ;;  %v1478_v1 = vsel %vm1038_vm9, 1.0, %v1778_v61 }
  0xb5   : >> { %v1479_v51 = vsel %vm1039_vm10, 1.0, %v1778_v61  ;;  %v1480_v5 = vsel %vm1040_vm11, 1.0, %v1778_v61  ;;  %v1481_v6 = vsel %vm1041_vm12, 1.0, %v1778_v61  ;;  %v1482_v45 = vsel %vm1042_vm13, 1.0, %v1778_v61 }
  0xb6   : >> { %v1059_v10 = vadd.f32 %v1772_v50, %v1475_v52  ;;  %v1060_v4 = vadd.f32 %v1768_v9, %v1476_v62  ;;  %v1061_v13 = vadd.f32 %v1764_v19, %v1477_v63  ;;  %v1062_v14 = vadd.f32 %v1760_v60, %v1478_v1 }
  0xb7   : >> { %v1063_v15 = vadd.f32 %v1756_v57, %v1479_v51  ;;  %v1064_v22 = vadd.f32 %v1752_v26, %v1480_v5  ;;  %v1065_v8 = vadd.f32 %v1748_v54, %v1481_v6  ;;  %v1066_v33 = vadd.f32 %v1744_v53, %v1482_v45  ;;  %v1518_v5 = vld [vmem:[%s2490_s2 + $0x4] ss:$0 sm:$0xff] }
  0xb8   : >> { %vm1074_vm14 = vcmp.eq.f32.partialorder %v2444_v48, %v1485_v20  ;;  %vm1075_vm15 = vcmp.eq.f32.partialorder %v2446_v39, %v1485_v20  ;;  %vm1076_vm0 = vcmp.eq.f32.partialorder %v2448_v0, %v1485_v20  ;;  %vm1077_vm1 = vcmp.eq.f32.partialorder %v2450_v46, %v1485_v20 }
  0xb9   : >> { %vm1078_vm2 = vcmp.eq.f32.partialorder %v2452_v47, %v1485_v20  ;;  %vm1079_vm3 = vcmp.eq.f32.partialorder %v2454_v28, %v1485_v20  ;;  %vm1080_vm6 = vcmp.eq.f32.partialorder %v2456_v29, %v1485_v20  ;;  %vm1081_vm7 = vcmp.eq.f32.partialorder %v2458_v55, %v1485_v20 }
  0xba   : >> { %v1486_v30 = vsel %vm1074_vm14, 1.0, %v1778_v61  ;;  %v1487_v23 = vsel %vm1075_vm15, 1.0, %v1778_v61  ;;  %v1488_v58 = vsel %vm1076_vm0, 1.0, %v1778_v61  ;;  %v1489_v56 = vsel %vm1077_vm1, 1.0, %v1778_v61 }
  0xbb   : >> { %v1490_v24 = vsel %vm1078_vm2, 1.0, %v1778_v61  ;;  %v1491_v25 = vsel %vm1079_vm3, 1.0, %v1778_v61  ;;  %v1492_v27 = vsel %vm1080_vm6, 1.0, %v1778_v61  ;;  %v1493_v59 = vsel %vm1081_vm7, 1.0, %v1778_v61 }
  0xbc   : >> { %v1098_v3 = vadd.f32 %v1486_v30, %v1059_v10  ;;  %v1099_v7 = vadd.f32 %v1487_v23, %v1060_v4  ;;  %v1100_v35 = vadd.f32 %v1488_v58, %v1061_v13  ;;  %v1101_v21 = vadd.f32 %v1489_v56, %v1062_v14 }
  0xbd   : >> { %v1102_v36 = vadd.f32 %v1490_v24, %v1063_v15  ;;  %v1103_v34 = vadd.f32 %v1491_v25, %v1064_v22  ;;  %v1104_v37 = vadd.f32 %v1492_v27, %v1065_v8  ;;  %v1105_v11 = vadd.f32 %v1493_v59, %v1066_v33  ;;  %v1529_v25 = vld [vmem:[%s2490_s2 + $0x5] ss:$0 sm:$0xff] }
  0xbe   : >> { %vm1113_vm8 = vcmp.eq.f32.partialorder %v2444_v48, %v1496_v31  ;;  %vm1114_vm9 = vcmp.eq.f32.partialorder %v2446_v39, %v1496_v31  ;;  %vm1115_vm10 = vcmp.eq.f32.partialorder %v2448_v0, %v1496_v31  ;;  %vm1116_vm11 = vcmp.eq.f32.partialorder %v2450_v46, %v1496_v31 }
  0xbf   : >> { %vm1117_vm12 = vcmp.eq.f32.partialorder %v2452_v47, %v1496_v31  ;;  %vm1118_vm13 = vcmp.eq.f32.partialorder %v2454_v28, %v1496_v31  ;;  %vm1119_vm14 = vcmp.eq.f32.partialorder %v2456_v29, %v1496_v31  ;;  %vm1120_vm15 = vcmp.eq.f32.partialorder %v2458_v55, %v1496_v31 }
  0xc0   : >> { %v1497_v12 = vsel %vm1113_vm8, 1.0, %v1778_v61  ;;  %v1498_v40 = vsel %vm1114_vm9, 1.0, %v1778_v61  ;;  %v1499_v32 = vsel %vm1115_vm10, 1.0, %v1778_v61  ;;  %v1500_v2 = vsel %vm1116_vm11, 1.0, %v1778_v61 }
  0xc1   : >> { %v1501_v49 = vsel %vm1117_vm12, 1.0, %v1778_v61  ;;  %v1502_v41 = vsel %vm1118_vm13, 1.0, %v1778_v61  ;;  %v1503_v42 = vsel %vm1119_vm14, 1.0, %v1778_v61  ;;  %v1504_v18 = vsel %vm1120_vm15, 1.0, %v1778_v61 }
  0xc2   : >> { %v1137_v43 = vadd.f32 %v1497_v12, %v1098_v3  ;;  %v1138_v17 = vadd.f32 %v1498_v40, %v1099_v7  ;;  %v1139_v53 = vadd.f32 %v1499_v32, %v1100_v35  ;;  %v1140_v54 = vadd.f32 %v1500_v2, %v1101_v21 }
  0xc3   : >> { %v1141_v26 = vadd.f32 %v1501_v49, %v1102_v36  ;;  %v1142_v57 = vadd.f32 %v1502_v41, %v1103_v34  ;;  %v1143_v60 = vadd.f32 %v1503_v42, %v1104_v37  ;;  %v1144_v19 = vadd.f32 %v1504_v18, %v1105_v11  ;;  %v1540_v41 = vld [vmem:[%s2490_s2 + $0x6] ss:$0 sm:$0xff] }
  0xc4   : >> { %vm1152_vm0 = vcmp.eq.f32.partialorder %v2444_v48, %v1507_v16  ;;  %vm1153_vm1 = vcmp.eq.f32.partialorder %v2446_v39, %v1507_v16  ;;  %vm1154_vm2 = vcmp.eq.f32.partialorder %v2448_v0, %v1507_v16  ;;  %vm1155_vm3 = vcmp.eq.f32.partialorder %v2450_v46, %v1507_v16 }
  0xc5   : >> { %vm1156_vm6 = vcmp.eq.f32.partialorder %v2452_v47, %v1507_v16  ;;  %vm1157_vm7 = vcmp.eq.f32.partialorder %v2454_v28, %v1507_v16  ;;  %vm1158_vm8 = vcmp.eq.f32.partialorder %v2456_v29, %v1507_v16  ;;  %vm1159_vm9 = vcmp.eq.f32.partialorder %v2458_v55, %v1507_v16 }
  0xc6   : >> { %v1508_v9 = vsel %vm1152_vm0, 1.0, %v1778_v61  ;;  %v1509_v50 = vsel %vm1153_vm1, 1.0, %v1778_v61  ;;  %v1510_v38 = vsel %vm1154_vm2, 1.0, %v1778_v61  ;;  %v1511_v52 = vsel %vm1155_vm3, 1.0, %v1778_v61 }
  0xc7   : >> { %v1512_v62 = vsel %vm1156_vm6, 1.0, %v1778_v61  ;;  %v1513_v63 = vsel %vm1157_vm7, 1.0, %v1778_v61  ;;  %v1514_v1 = vsel %vm1158_vm8, 1.0, %v1778_v61  ;;  %v1515_v51 = vsel %vm1159_vm9, 1.0, %v1778_v61 }
  0xc8   : >> { %v1176_v6 = vadd.f32 %v1508_v9, %v1137_v43  ;;  %v1177_v45 = vadd.f32 %v1509_v50, %v1138_v17  ;;  %v1178_v20 = vadd.f32 %v1510_v38, %v1139_v53  ;;  %v1179_v10 = vadd.f32 %v1511_v52, %v1140_v54 }
  0xc9   : >> { %v1180_v4 = vadd.f32 %v1512_v62, %v1141_v26  ;;  %v1181_v13 = vadd.f32 %v1513_v63, %v1142_v57  ;;  %v1182_v14 = vadd.f32 %v1514_v1, %v1143_v60  ;;  %v1183_v15 = vadd.f32 %v1515_v51, %v1144_v19  ;;  %v1551_v63 = vld [vmem:[%s2490_s2 + $0x7] ss:$0 sm:$0xff] }
  0xca   : >> { %vm1191_vm10 = vcmp.eq.f32.partialorder %v2444_v48, %v1518_v5  ;;  %vm1192_vm11 = vcmp.eq.f32.partialorder %v2446_v39, %v1518_v5  ;;  %vm1193_vm12 = vcmp.eq.f32.partialorder %v2448_v0, %v1518_v5  ;;  %vm1194_vm13 = vcmp.eq.f32.partialorder %v2450_v46, %v1518_v5 }
  0xcb   : >> { %vm1195_vm14 = vcmp.eq.f32.partialorder %v2452_v47, %v1518_v5  ;;  %vm1196_vm15 = vcmp.eq.f32.partialorder %v2454_v28, %v1518_v5  ;;  %vm1197_vm0 = vcmp.eq.f32.partialorder %v2456_v29, %v1518_v5  ;;  %vm1198_vm1 = vcmp.eq.f32.partialorder %v2458_v55, %v1518_v5 }
  0xcc   : >> { %v1519_v22 = vsel %vm1191_vm10, 1.0, %v1778_v61  ;;  %v1520_v8 = vsel %vm1192_vm11, 1.0, %v1778_v61  ;;  %v1521_v33 = vsel %vm1193_vm12, 1.0, %v1778_v61  ;;  %v1522_v30 = vsel %vm1194_vm13, 1.0, %v1778_v61 }
  0xcd   : >> { %v1523_v23 = vsel %vm1195_vm14, 1.0, %v1778_v61  ;;  %v1524_v58 = vsel %vm1196_vm15, 1.0, %v1778_v61  ;;  %v1525_v56 = vsel %vm1197_vm0, 1.0, %v1778_v61  ;;  %v1526_v24 = vsel %vm1198_vm1, 1.0, %v1778_v61 }
  0xce   : >> { %v1215_v27 = vadd.f32 %v1519_v22, %v1176_v6  ;;  %v1216_v59 = vadd.f32 %v1520_v8, %v1177_v45  ;;  %v1217_v31 = vadd.f32 %v1521_v33, %v1178_v20  ;;  %v1218_v3 = vadd.f32 %v1522_v30, %v1179_v10 }
  0xcf   : >> { %v1219_v7 = vadd.f32 %v1523_v23, %v1180_v4  ;;  %v1220_v35 = vadd.f32 %v1524_v58, %v1181_v13  ;;  %v1221_v21 = vadd.f32 %v1525_v56, %v1182_v14  ;;  %v1222_v36 = vadd.f32 %v1526_v24, %v1183_v15 }
  0xd0   : >> { %vm1230_vm2 = vcmp.eq.f32.partialorder %v2444_v48, %v1529_v25  ;;  %vm1231_vm3 = vcmp.eq.f32.partialorder %v2446_v39, %v1529_v25  ;;  %vm1232_vm6 = vcmp.eq.f32.partialorder %v2448_v0, %v1529_v25  ;;  %vm1233_vm7 = vcmp.eq.f32.partialorder %v2450_v46, %v1529_v25 }
  0xd1   : >> { %vm1234_vm8 = vcmp.eq.f32.partialorder %v2452_v47, %v1529_v25  ;;  %vm1235_vm9 = vcmp.eq.f32.partialorder %v2454_v28, %v1529_v25  ;;  %vm1236_vm10 = vcmp.eq.f32.partialorder %v2456_v29, %v1529_v25  ;;  %vm1237_vm11 = vcmp.eq.f32.partialorder %v2458_v55, %v1529_v25 }
  0xd2   : >> { %v1530_v34 = vsel %vm1230_vm2, 1.0, %v1778_v61  ;;  %v1531_v37 = vsel %vm1231_vm3, 1.0, %v1778_v61  ;;  %v1532_v11 = vsel %vm1232_vm6, 1.0, %v1778_v61  ;;  %v1533_v12 = vsel %vm1233_vm7, 1.0, %v1778_v61 }
  0xd3   : >> { %v1534_v40 = vsel %vm1234_vm8, 1.0, %v1778_v61  ;;  %v1535_v32 = vsel %vm1235_vm9, 1.0, %v1778_v61  ;;  %v1536_v2 = vsel %vm1236_vm10, 1.0, %v1778_v61  ;;  %v1537_v49 = vsel %vm1237_vm11, 1.0, %v1778_v61 }
  0xd4   : >> { %v1254_v42 = vadd.f32 %v1530_v34, %v1215_v27  ;;  %v1255_v18 = vadd.f32 %v1531_v37, %v1216_v59  ;;  %v1256_v16 = vadd.f32 %v1532_v11, %v1217_v31  ;;  %v1257_v43 = vadd.f32 %v1533_v12, %v1218_v3 }
  0xd5   : >> { %v1258_v17 = vadd.f32 %v1534_v40, %v1219_v7  ;;  %v1259_v53 = vadd.f32 %v1535_v32, %v1220_v35  ;;  %v1260_v54 = vadd.f32 %v1536_v2, %v1221_v21  ;;  %v1261_v26 = vadd.f32 %v1537_v49, %v1222_v36 }
  0xd6   : >> { %vm1269_vm12 = vcmp.eq.f32.partialorder %v2444_v48, %v1540_v41  ;;  %vm1270_vm13 = vcmp.eq.f32.partialorder %v2446_v39, %v1540_v41  ;;  %vm1271_vm14 = vcmp.eq.f32.partialorder %v2448_v0, %v1540_v41  ;;  %vm1272_vm15 = vcmp.eq.f32.partialorder %v2450_v46, %v1540_v41 }
  0xd7   : >> { %vm1273_vm0 = vcmp.eq.f32.partialorder %v2452_v47, %v1540_v41  ;;  %vm1274_vm1 = vcmp.eq.f32.partialorder %v2454_v28, %v1540_v41  ;;  %vm1275_vm2 = vcmp.eq.f32.partialorder %v2456_v29, %v1540_v41  ;;  %vm1276_vm3 = vcmp.eq.f32.partialorder %v2458_v55, %v1540_v41 }
  0xd8   : >> { %v1541_v57 = vsel %vm1269_vm12, 1.0, %v1778_v61  ;;  %v1542_v60 = vsel %vm1270_vm13, 1.0, %v1778_v61  ;;  %v1543_v19 = vsel %vm1271_vm14, 1.0, %v1778_v61  ;;  %v1544_v9 = vsel %vm1272_vm15, 1.0, %v1778_v61 }
  0xd9   : >> { %v1545_v50 = vsel %vm1273_vm0, 1.0, %v1778_v61  ;;  %v1546_v38 = vsel %vm1274_vm1, 1.0, %v1778_v61  ;;  %v1547_v52 = vsel %vm1275_vm2, 1.0, %v1778_v61  ;;  %v1548_v62 = vsel %vm1276_vm3, 1.0, %v1778_v61 }
  0xda   : >> { %v1293_v1 = vadd.f32 %v1541_v57, %v1254_v42  ;;  %v1294_v51 = vadd.f32 %v1542_v60, %v1255_v18  ;;  %v1295_v5 = vadd.f32 %v1543_v19, %v1256_v16  ;;  %v1296_v6 = vadd.f32 %v1544_v9, %v1257_v43 }
  0xdb   : >> { %v1297_v45 = vadd.f32 %v1545_v50, %v1258_v17  ;;  %v1298_v20 = vadd.f32 %v1546_v38, %v1259_v53  ;;  %v1299_v10 = vadd.f32 %v1547_v52, %v1260_v54  ;;  %v1300_v4 = vadd.f32 %v1548_v62, %v1261_v26 }
  0xdc   : >> { %vm1308_vm6 = vcmp.eq.f32.partialorder %v2444_v48, %v1551_v63  ;;  %vm1309_vm7 = vcmp.eq.f32.partialorder %v2446_v39, %v1551_v63  ;;  %vm1310_vm8 = vcmp.eq.f32.partialorder %v2448_v0, %v1551_v63  ;;  %vm1311_vm9 = vcmp.eq.f32.partialorder %v2450_v46, %v1551_v63 }
  0xdd   : >> { %vm1312_vm10 = vcmp.eq.f32.partialorder %v2452_v47, %v1551_v63  ;;  %vm1313_vm11 = vcmp.eq.f32.partialorder %v2454_v28, %v1551_v63  ;;  %vm1314_vm12 = vcmp.eq.f32.partialorder %v2456_v29, %v1551_v63  ;;  %vm1315_vm13 = vcmp.eq.f32.partialorder %v2458_v55, %v1551_v63  ;;  %1018 = sbr.rel (!%p1016_p0) target bundleno = 175 (0xaf), region = 47 }
  0xde   : >> { %v1552_v13 = vsel %vm1308_vm6, 1.0, %v1778_v61  ;;  %v1553_v14 = vsel %vm1309_vm7, 1.0, %v1778_v61  ;;  %v1554_v15 = vsel %vm1310_vm8, 1.0, %v1778_v61  ;;  %v1555_v22 = vsel %vm1311_vm9, 1.0, %v1778_v61 }
  0xdf   : >> { %v1556_v8 = vsel %vm1312_vm10, 1.0, %v1778_v61  ;;  %v1557_v33 = vsel %vm1313_vm11, 1.0, %v1778_v61  ;;  %v1558_v30 = vsel %vm1314_vm12, 1.0, %v1778_v61  ;;  %v1559_v23 = vsel %vm1315_vm13, 1.0, %v1778_v61 }
  0xe0   : >> { %v1332_v58 = vadd.f32 %v1552_v13, %v1293_v1   ;;  %v1333_v56 = vadd.f32 %v1553_v14, %v1294_v51   ;;  %v1334_v24 = vadd.f32 %v1554_v15, %v1295_v5   ;;  %v1335_v25 = vadd.f32 %v1555_v22, %v1296_v6  }
  0xe1   : >> { %v1336_v27 = vadd.f32 %v1556_v8, %v1297_v45   ;;  %v1337_v59 = vadd.f32 %v1557_v33, %v1298_v20   ;;  %v1338_v31 = vadd.f32 %v1558_v30, %v1299_v10   ;;  %v1339_v3 = vadd.f32 %v1559_v23, %v1300_v4  }
  0xe2   : >> { %v2680_v60 = vmov %v1335_v25  ;;  %v2681_v19 = vmov %v1334_v24  ;;  %v2682_v9 = vmov %v1333_v56  ;;  %v2683_v50 = vmov %v1332_v58 }
  0xe3   : >> { %v2676_v53 = vmov %v1339_v3  ;;  %v2677_v54 = vmov %v1338_v31  ;;  %v2678_v26 = vmov %v1337_v59  ;;  %v2679_v57 = vmov %v1336_v27 }
  0xe4   : > { %v1340_v61 = vmul.f32 0.0030864198, %v1332_v58  ;;  %v1341_v7 = vmul.f32 0.0030864198, %v1333_v56  ;;  %v1342_v35 = vmul.f32 0.0030864198, %v1334_v24 }
  0xe5   : > { %v1343_v21 = vmul.f32 0.0030864198, %v1335_v25  ;;  %v1344_v36 = vmul.f32 0.0030864198, %v1336_v27  ;;  %v1345_v34 = vmul.f32 0.0030864198, %v1337_v59 }
  0xe6   : > { %1650 = vlog2.f32 %v1340_v61  ;;  %v1346_v37 = vmul.f32 0.0030864198, %v1338_v31  ;;  %v1347_v11 = vmul.f32 0.0030864198, %v1339_v3  ;;  %s1779_s3 = smov (%p999_p1), [#allocation3]  }
  0xe7   : > { %1652 = vlog2.f32 %v1341_v7  ;;  %s1402_s4 = sshll.u32 (%p999_p1), %s1779_s3, 4  ;;  %s1403_s4 = int_to_ptr.vmem [resolvable:$true] %s1402_s4 }
  0xe8   : > { %1654 = vlog2.f32 %v1342_v35  ;;  %s1666_s5 = scalar_lea.vmem (%p999_p1), %s1403_s4, 16  ;;  %s1670_s6 = scalar_lea.vmem (%p999_p1), %s1403_s4, 32 }
  0xe9   : > { %1656 = vlog2.f32 %v1343_v21  ;;  %p1667_p2 = scmp.ne.s32.totalorder (%p999_p1), %s1403_s4, %s1666_s5  ;;  %p1671_p3 = scmp.lt.s32.totalorder (%p999_p1), %s1403_s4, %s1403_s4 }
  0xea   : > { %1658 = vlog2.f32 %v1344_v36  ;;  %p1672_p4 = scmp.lt.s32.totalorder (%p999_p1), %s1670_s6, %s1666_s5 }
  0xeb   : > { %1660 = vlog2.f32 %v1345_v34 }
  0xec   : > { %1662 = vlog2.f32 %v1346_v37  ;;  %p1673_p5 = por (%p999_p1), %p1672_p4, %p1671_p3 }
  0xed   : > { %1664 = vlog2.f32 %v1347_v11 }
  0xee   :  { %p1674_p6 = pnand (%p999_p1), %p1673_p5, %p1667_p2 }
  0xf0   : > { %v1651_v12 = vpop.eup %1650 }
  0xf1   : > { %v1653_v40 = vpop.eup %1652  ;;  %v1349_v32 = vmul.f32 0.6931472, %v1651_v12 }
  0xf2   : > { %v1655_v2 = vpop.eup %1654  ;;  %v1351_v48 = vmul.f32 0.6931472, %v1653_v40 }
  0xf3   : > { %v1657_v39 = vpop.eup %1656  ;;  %v1353_v0 = vmul.f32 0.6931472, %v1655_v2  ;;  %v1364_v46 = vmul.f32 1.442695, %v1349_v32 }
  0xf4   : > { %v1659_v47 = vpop.eup %1658  ;;  %v1355_v28 = vmul.f32 0.6931472, %v1657_v39  ;;  %v1365_v29 = vmul.f32 1.442695, %v1351_v48 }
  0xf5   : > { %v1661_v55 = vpop.eup %1660  ;;  %v1357_v49 = vmul.f32 0.6931472, %v1659_v47  ;;  %v1366_v41 = vmul.f32 1.442695, %v1353_v0  ;;  %v1372_v42 = vsel %vm948_vm4, %v1364_v46, 0.0 }
  0xf6   : > { %v1663_v18 = vpop.eup %1662  ;;  %v1359_v16 = vmul.f32 0.6931472, %v1661_v55  ;;  %v1367_v43 = vmul.f32 1.442695, %v1355_v28  ;;  %v1373_v17 = vsel %vm948_vm4, %v1365_v29, 0.0 }
  0xf7   : > { %v1665_v53 = vpop.eup %1664  ;;  %v1361_v54 = vmul.f32 0.6931472, %v1663_v18  ;;  %v1368_v26 = vmul.f32 1.442695, %v1357_v49  ;;  %v1374_v57 = vadd.f32 %v1373_v17, %v1372_v42  ;;  %v1375_v60 = vsel %vm948_vm4, %v1366_v41, 0.0 }
  0xf8   : > { %v1363_v19 = vmul.f32 0.6931472, %v1665_v53  ;;  %v1369_v9 = vmul.f32 1.442695, %v1359_v16  ;;  %v1377_v50 = vsel %vm948_vm4, %v1367_v43, 0.0 }
  0xf9   : > { %v1376_v38 = vadd.f32 %v1375_v60, %v1374_v57  ;;  %v1370_v52 = vmul.f32 1.442695, %v1361_v54  ;;  %v1379_v62 = vsel %vm948_vm4, %v1368_v26, 0.0 }
  0xfa   : > { %v1371_v1 = vmul.f32 1.442695, %v1363_v19  ;;  %v1381_v51 = vsel %vm948_vm4, %v1369_v9, 0.0 }
  0xfb   : > { %v1378_v63 = vadd.f32 %v1377_v50, %v1376_v38  ;;  %v1383_v6 = vsel %vm948_vm4, %v1370_v52, 0.0 }
  0xfc   : > { %v1385_v20 = vsel %vm948_vm4, %v1371_v1, 0.0 }
  0xfd   : > { %v1380_v5 = vadd.f32 %v1379_v62, %v1378_v63 }
  0xff   : > { %v1382_v45 = vadd.f32 %v1381_v51, %v1380_v5 }
 0x101   : > { %v1384_v10 = vadd.f32 %v1383_v6, %v1382_v45 }
 0x103   : > { %v1386_v4 = vadd.f32 %v1385_v20, %v1384_v10 }
 0x105   : > { %v1387_v13 = vrot.slane %v1386_v4, 4 }
 0x107   : > { %v1388_v14 = vadd.f32 %v1387_v13, %v1386_v4 }
 0x109   : > { %v1389_v15 = vrot.slane %v1388_v14, 2 }
 0x10b   : > { %v1390_v22 = vadd.f32 %v1389_v15, %v1388_v14 }
 0x10d   : > { %v1391_v8 = vrot.slane %v1390_v22, 1  ;;  %1001 = sbr.rel (!%p999_p1) target bundleno = 166 (0xa6), region = 58 }
 0x10f   : > { %v1392_v33 = vadd.f32 %v1391_v8, %v1390_v22 }
 0x111   : > { %v1393_v30 = vadd.f32 %v1736_v44, %v1392_v33  }
 0x113   : > { %v2684_v44 = vmov %v1393_v30  ;;  %v1394_v23 = vmul.f32 (%p999_p1), -0.0030864198, %v1393_v30 }
 0x115   :  { %1395 = vst.msk [vmem:[#allocation3] sm:$0x1] %vm950_vm5, %v1394_v23 }
 0x116   :  { %1677 = shalt.err (!%p1674_p6)
}
 0x117   :  { %s1678_s9 = scalar_lea.hbm %s2675_s1, 16 }
 0x118   :  { %p1679_p7 = scmp.ne.s32.totalorder %s2675_s1, %s1678_s9  ;;  %p1682_p8 = scmp.lt.u32.totalorder %s1678_s9, %s2675_s1 }
 0x11a   :  { %p1684_p9 = pnand %p1682_p8, %p1679_p7 }
 0x11c   :  { %1687 = shalt.err (!%p1684_p9)
}
 0x11d   :  { %1405 = dma.vmem_to_hbm [thread:$0]  %s1403_s4, 16, %s2675_s1, [#allocation4]  }
 0x11e   :  { %1732 = dma.done.wait [#allocation4], 16  }
 0x11f   :  { %1733 = vsyncadd [#allocation4], 4294967280 }
 0x120   :  { %1409 = vsyncpa [#allocation4], 1 }

</bundles_post_ra>
